<compile_context>
chip_gen: v7x
topology: tpu7x:2x2x1
jax: 0.10.0
libtpu: 0.0.40
codegen_flags: <defaults>
</compile_context>

<pallas_src>
import functools
import math

import jax
import jax.numpy as jnp
from jax.experimental import pallas as pl
from jax.experimental.pallas import tpu as pltpu

# ----------------------- model config (small synthetic BERT) -----------------------
HIDDEN = 32
HEADS = 4
HEAD_DIM = HIDDEN // HEADS
LAYERS = 2
INTER = 128
VOCAB = 128
MAX_POS = 64
EMB_ROWS = VOCAB + MAX_POS + 1        # word | position | token-type-0 rows of the table
LN_EPS = 1e-12
MASK_NEG = -1e30                      # additive mask value for disallowed positions
MM_DTYPE = jnp.bfloat16               # MXU operand dtype (f32 accumulation)

VMEM_SPEC = pl.BlockSpec(memory_space=pltpu.MemorySpace.VMEM)

# packed small-vector layout: rows 0..7 globals, then 8 rows per layer
ROW_EMB_G, ROW_EMB_B, ROW_CLS_B = 0, 1, 2
OFF_BQKV, OFF_BO, OFF_LN1G, OFF_LN1B, OFF_BI, OFF_BO2, OFF_LN2G, OFF_LN2B = range(8)
VEC_ROWS = 8 + 8 * LAYERS


def _layer_row(l):
    return 8 + 8 * l


# ------------------------------ in-kernel helpers -----------------------------------
def _ln(x, g, b):
    mu = jnp.mean(x, axis=-1, keepdims=True)
    var = jnp.mean(jnp.square(x - mu), axis=-1, keepdims=True)
    return (x - mu) * jax.lax.rsqrt(var + LN_EPS) * g + b


def _gelu(x):   # exact (erf) GELU, same as BERT's nn.GELU default
    return 0.5 * x * (1.0 + jax.lax.erf(x * (1.0 / math.sqrt(2.0))))


def _mm(a, b):  # MXU matmul: bf16 operands (weights are pre-stored bf16), f32 accumulate
    return jnp.dot(a.astype(MM_DTYPE), b.astype(MM_DTYPE),
                   preferred_element_type=jnp.float32)


# ------------------------------ fused encoder body ----------------------------------
def _encoder(ids_ref, add_mask, embtab_ref, wqkv_ref, wo_ref, wi_ref, wo2_ref, vecs,
             batch, seq):
    """Full BERT encoder on refs/values already resident in VMEM. Returns (B*S, H) f32."""
    rows = batch * seq
    scale = 1.0 / math.sqrt(HEAD_DIM)

    # ---- embeddings: word + position + token-type(0) via ONE one-hot MXU matmul ----
    ids3 = ids_ref[...]                                                # (B, S, 1) int32
    col3 = jax.lax.broadcasted_iota(jnp.int32, (batch, seq, EMB_ROWS), 2)
    pos3 = jax.lax.broadcasted_iota(jnp.int32, (batch, seq, EMB_ROWS), 1)
    onehot = jnp.logical_or(jnp.logical_or(col3 == ids3,              # word row
                                           col3 == VOCAB + pos3),     # position row
                            col3 == VOCAB + MAX_POS)                  # token-type-0 row
    onehot = onehot.astype(jnp.float32).reshape(rows, EMB_ROWS)
    emb = _mm(onehot, embtab_ref[...])                                 # (B*S, H) f32
    h = _ln(emb, vecs[ROW_EMB_G:ROW_EMB_G + 1, :HIDDEN],
            vecs[ROW_EMB_B:ROW_EMB_B + 1, :HIDDEN])

    for l in range(LAYERS):                                            # static unroll
        base = _layer_row(l)
        wqkv_l = wqkv_ref[l]                                           # (H, 3H) bf16
        wo_l = wo_ref[l]                                               # (H, H)  bf16

        # fused Q|K|V projection: one (B*S, 3H) matmul
        qkv = _mm(h, wqkv_l) + vecs[base + OFF_BQKV:base + OFF_BQKV + 1, :3 * HIDDEN]

        # batched multi-head attention (batch dim = B), static loop over HEADS only
        attn = jnp.zeros((rows, HIDDEN), jnp.float32)
        for hd in range(HEADS):
            c0 = hd * HEAD_DIM
            q = qkv[:, c0:c0 + HEAD_DIM].reshape(batch, seq, HEAD_DIM).astype(MM_DTYPE)
            k = qkv[:, HIDDEN + c0:HIDDEN + c0 + HEAD_DIM].reshape(
                batch, seq, HEAD_DIM).astype(MM_DTYPE)
            v = qkv[:, 2 * HIDDEN + c0:2 * HIDDEN + c0 + HEAD_DIM].reshape(
                batch, seq, HEAD_DIM).astype(MM_DTYPE)
            s = jnp.einsum('bqd,bkd->bqk', q, k,
                           preferred_element_type=jnp.float32) * scale     # (B,S,S)
            if add_mask is not None:
                s = s + add_mask
            s = s - jnp.max(s, axis=-1, keepdims=True)
            p = jnp.exp(s)
            p = p * pl.reciprocal(jnp.sum(p, axis=-1, keepdims=True), approx=True)
            ctx = jnp.einsum('bqk,bkd->bqd', p.astype(MM_DTYPE), v,
                             preferred_element_type=jnp.float32)           # (B,S,D)
            # ctx @ Wo == sum_h ctx_h @ Wo[h*D:(h+1)*D, :]  (block-matmul identity)
            attn = attn + _mm(ctx.reshape(rows, HEAD_DIM), wo_l[c0:c0 + HEAD_DIM, :])

        attn = attn + vecs[base + OFF_BO:base + OFF_BO + 1, :HIDDEN]
        h = _ln(attn + h, vecs[base + OFF_LN1G:base + OFF_LN1G + 1, :HIDDEN],
                vecs[base + OFF_LN1B:base + OFF_LN1B + 1, :HIDDEN])

        inter = _gelu(_mm(h, wi_ref[l]) + vecs[base + OFF_BI:base + OFF_BI + 1, :INTER])
        ffn = _mm(inter, wo2_ref[l]) + vecs[base + OFF_BO2:base + OFF_BO2 + 1, :HIDDEN]
        h = _ln(ffn + h, vecs[base + OFF_LN2G:base + OFF_LN2G + 1, :HIDDEN],
                vecs[base + OFF_LN2B:base + OFF_LN2B + 1, :HIDDEN])
    return h


# ------------------------- fully fused forward kernels ------------------------------
def _infer_kernel(ids_ref, embtab_ref, wqkv_ref, wo_ref, wi_ref, wo2_ref,
                  cw_ref, vecs_ref, probs_ref, *, batch, seq):
    # Mirrors PyTorch inference: bert(x) WITHOUT mask, then softmax(classify(.)).
    vecs = vecs_ref[...]
    h = _encoder(ids_ref, None, embtab_ref, wqkv_ref, wo_ref, wi_ref, wo2_ref, vecs,
                 batch, seq)
    logits = _mm(h, cw_ref[...]) + vecs[ROW_CLS_B:ROW_CLS_B + 1, :VOCAB]   # (B*S, 128)
    s = logits - jnp.max(logits, axis=-1, keepdims=True)
    e = jnp.exp(s)
    probs_ref[...] = e / jnp.sum(e, axis=-1, keepdims=True)


def _train_kernel(ids_ref, mask_ref, y_ref, embtab_ref, wqkv_ref, wo_ref, wi_ref,
                  wo2_ref, cw_ref, vecs_ref, loss_ref, *, batch, seq):
    # Additive mask built in-kernel from the 0/1 mask (shared by all heads).
    add_mask = (1.0 - mask_ref[...]) * MASK_NEG                            # (B, S, S)
    vecs = vecs_ref[...]
    h = _encoder(ids_ref, add_mask, embtab_ref, wqkv_ref, wo_ref, wi_ref, wo2_ref, vecs,
                 batch, seq)
    # classify dense + log-softmax + masked NLL (ignore_index = -1) -> scalar
    logits = _mm(h, cw_ref[...]) + vecs[ROW_CLS_B:ROW_CLS_B + 1, :VOCAB]   # (M, V)
    s = logits - jnp.max(logits, axis=-1, keepdims=True)
    logp = s - jnp.log(jnp.sum(jnp.exp(s), axis=-1, keepdims=True))
    y = y_ref[...]                                                         # (M, 1) int32
    valid = y != -1
    safe = jnp.where(valid, y, 0)
    cols = jax.lax.broadcasted_iota(jnp.int32, logits.shape, 1)
    picked = jnp.sum(jnp.where(cols == safe, logp, 0.0), axis=-1, keepdims=True)
    vf = valid.astype(jnp.float32)
    total = jnp.sum(-picked * vf, axis=0, keepdims=True)                   # (1, 1)
    count = jnp.sum(vf, axis=0, keepdims=True)                             # (1, 1)
    loss_ref[...] = total / jnp.maximum(count, 1.0)


# --------------------------- parameter initialization -------------------------------
def init_params(key):
    """Params in the kernel's packed layout (weights bf16, small vectors packed)."""
    def nrm(k, shape, scale=0.02):
        return scale * jax.random.normal(k, shape, dtype=jnp.float32)

    keys = iter(jax.random.split(key, 4 + LAYERS * 6))
    wqkv, wo, wi, wo2 = [], [], [], []
    for _ in range(LAYERS):
        wq = nrm(next(keys), (HIDDEN, HIDDEN))
        wk = nrm(next(keys), (HIDDEN, HIDDEN))
        wv = nrm(next(keys), (HIDDEN, HIDDEN))
        wqkv.append(jnp.concatenate([wq, wk, wv], axis=1))     # pre-fused (H, 3H)
        wo.append(nrm(next(keys), (HIDDEN, HIDDEN)))
        wi.append(nrm(next(keys), (HIDDEN, INTER)))
        wo2.append(nrm(next(keys), (INTER, HIDDEN)))

    word_emb = nrm(next(keys), (VOCAB, HIDDEN))
    pos_emb = nrm(next(keys), (MAX_POS, HIDDEN))
    type_emb = nrm(next(keys), (2, HIDDEN))
    classify_w = nrm(next(keys), (HIDDEN, VOCAB))

    # single embedding table: word rows | position rows | token-type-0 row
    embtab = jnp.concatenate([word_emb, pos_emb, type_emb[0:1]], axis=0).astype(MM_DTYPE)

    # pack every tiny vector (LN gamma/beta, biases, classify bias) into ONE array
    vecs = jnp.zeros((VEC_ROWS, 128), jnp.float32)
    vecs = vecs.at[ROW_EMB_G, :HIDDEN].set(1.0)               # emb LN gamma; beta = 0
    for l in range(LAYERS):
        base = _layer_row(l)
        vecs = vecs.at[base + OFF_LN1G, :HIDDEN].set(1.0)     # LN gammas = 1
        vecs = vecs.at[base + OFF_LN2G, :HIDDEN].set(1.0)     # all biases = 0

    return {
        "embtab": embtab,                                      # (V+P+1, H) bf16
        "wqkv": jnp.stack(wqkv).astype(MM_DTYPE),              # (L, H, 3H) bf16
        "wo": jnp.stack(wo).astype(MM_DTYPE),                  # (L, H, H)  bf16
        "wi": jnp.stack(wi).astype(MM_DTYPE),                  # (L, H, I)  bf16
        "wo2": jnp.stack(wo2).astype(MM_DTYPE),                # (L, I, H)  bf16
        "cw": classify_w.astype(MM_DTYPE),                     # (H, V)     bf16
        "vecs": vecs,                                          # (8+8L, 128) f32
    }


# --------------------------------- model forward ------------------------------------
def language_model_forward(params, x, mask=None, y=None):
    """Mirror of LanguageModel.forward — a single fused pallas_call either way."""
    B, S = x.shape
    ids = x.reshape(B, S, 1).astype(jnp.int32)
    common = (params["embtab"], params["wqkv"], params["wo"], params["wi"],
              params["wo2"], params["cw"], params["vecs"])

    # TODO(synk): at real BERT sizes, add a 'parallel' grid axis over token blocks
    # (v7x megacore) and stream per-layer weights (grid axis over L / pl.Buffered(2))
    # with vmem_limit_bytes derived from 64 MiB VMEM; pointless at B*S=16.
    if y is not None:
        if mask is None:
            m = jnp.ones((B, S, S), jnp.float32)
        else:
            m = mask.astype(jnp.float32)
            if m.ndim == 2:                                    # (B, S) padding mask
                m = jnp.broadcast_to(m[:, None, :], (B, S, S))
        yv = y.reshape(B * S, 1).astype(jnp.int32)
        kernel = functools.partial(_train_kernel, batch=B, seq=S)
        loss = pl.pallas_call(
            kernel,
            out_shape=jax.ShapeDtypeStruct((1, 1), jnp.float32),
            in_specs=[VMEM_SPEC] * 10,
            out_specs=VMEM_SPEC,
        )(ids, m, yv, *common)
        return loss[0, 0]
    else:
        # NOTE: matches the PyTorch module — inference calls self.bert(x) WITHOUT the mask.
        kernel = functools.partial(_infer_kernel, batch=B, seq=S)
        probs = pl.pallas_call(
            kernel,
            out_shape=jax.ShapeDtypeStruct((B * S, VOCAB), jnp.float32),
            in_specs=[VMEM_SPEC] * 8,
            out_specs=VMEM_SPEC,
        )(ids, *common)
        return probs.reshape(B, S, VOCAB)


# ------------------------------------- demo -----------------------------------------
if __name__ == "__main__":
    B, S = 2, 8
    key = jax.random.PRNGKey(0)
    k_param, k_tok, k_lab = jax.random.split(key, 3)

    params = init_params(k_param)

    x = jax.random.randint(k_tok, (B, S), 0, VOCAB, dtype=jnp.int32)
    # causal (B, S, S) mask like the sft training script builds
    causal = jnp.tril(jnp.ones((S, S), jnp.float32))
    mask = jnp.broadcast_to(causal[None, :, :], (B, S, S))
    y = jax.random.randint(k_lab, (B, S), 0, VOCAB, dtype=jnp.int32)
    y = y.at[:, :2].set(-1)  # some ignored positions (ignore_index=-1)

    # inference branch: softmax distribution over vocab (one fused kernel launch)
    probs = language_model_forward(params, x)
    probs = jax.block_until_ready(probs)
    assert probs.shape == (B, S, VOCAB)
    assert bool(jnp.all(jnp.isfinite(probs)))
    assert bool(jnp.allclose(jnp.sum(probs, axis=-1), 1.0, atol=1e-4))

    # training branch: masked cross-entropy loss (one fused kernel launch)
    loss = language_model_forward(params, x, mask=mask, y=y)
    loss = jax.block_until_ready(loss)
    assert loss.shape == ()
    assert bool(jnp.isfinite(loss))

    print("KERNEL_OK")
</pallas_src>

<mosaic_0001>
module attributes {stable_mosaic.version = 11 : i64} {
  func.func @_infer_kernel(%arg0: memref<2x8x1xi32, #tpu.memory_space<vmem>>, %arg1: memref<193x32xbf16, #tpu.memory_space<vmem>>, %arg2: memref<2x32x96xbf16, #tpu.memory_space<vmem>>, %arg3: memref<2x32x32xbf16, #tpu.memory_space<vmem>>, %arg4: memref<2x32x128xbf16, #tpu.memory_space<vmem>>, %arg5: memref<2x128x32xbf16, #tpu.memory_space<vmem>>, %arg6: memref<32x128xbf16, #tpu.memory_space<vmem>>, %arg7: memref<24x128xf32, #tpu.memory_space<vmem>>, %arg8: memref<16x128xf32, #tpu.memory_space<vmem>>) attributes {dimension_semantics = [], scalar_prefetch = 0 : i64, scratch_operands = 0 : i64, tpu.core_type = #tpu.core_type<tc>} {
    %c0 = arith.constant 0 : index
    %c0_0 = arith.constant 0 : index
    %0 = vector.load %arg7[%c0, %c0_0] : memref<24x128xf32, #tpu.memory_space<vmem>>, vector<24x128xf32>
    %c0_1 = arith.constant 0 : index
    %c0_2 = arith.constant 0 : index
    %c0_3 = arith.constant 0 : index
    %1 = vector.load %arg0[%c0_1, %c0_2, %c0_3] : memref<2x8x1xi32, #tpu.memory_space<vmem>>, vector<2x8x1xi32>
    %2 = tpu.iota {dimensions = array<i32: 2>} : vector<2x8x193xi32>
    %3 = tpu.iota {dimensions = array<i32: 1>} : vector<2x8x193xi32>
    %4 = vector.broadcast %1 : vector<2x8x1xi32> to vector<2x8x193xi32>
    %5 = arith.cmpi eq, %2, %4 : vector<2x8x193xi32>
    %c128_i32 = arith.constant 128 : i32
    %6 = vector.broadcast %c128_i32 : i32 to vector<2x8x193xi32>
    %7 = arith.addi %6, %3 : vector<2x8x193xi32>
    %8 = arith.cmpi eq, %2, %7 : vector<2x8x193xi32>
    %9 = arith.ori %5, %8 : vector<2x8x193xi1>
    %c192_i32 = arith.constant 192 : i32
    %10 = vector.broadcast %c192_i32 : i32 to vector<2x8x193xi32>
    %11 = arith.cmpi eq, %2, %10 : vector<2x8x193xi32>
    %12 = arith.ori %9, %11 : vector<2x8x193xi1>
    %13 = arith.extui %12 : vector<2x8x193xi1> to vector<2x8x193xi32>
    %14 = arith.sitofp %13 : vector<2x8x193xi32> to vector<2x8x193xf32>
    %15 = vector.shape_cast %14 : vector<2x8x193xf32> to vector<16x193xf32>
    %c0_4 = arith.constant 0 : index
    %c0_5 = arith.constant 0 : index
    %16 = vector.load %arg1[%c0_4, %c0_5] : memref<193x32xbf16, #tpu.memory_space<vmem>>, vector<193x32xbf16>
    %17 = arith.truncf %15 : vector<16x193xf32> to vector<16x193xbf16>
    %cst = arith.constant dense<0.000000e+00> : vector<16x32xf32>
    %18 = tpu.matmul %17, %16, %cst {dimension_numbers = #tpu.dot_dimension_numbers<[1], [0], [0], [1], [0, 0, 1, 1], [], []>} : vector<16x193xbf16>, vector<193x32xbf16>, vector<16x32xf32> -> vector<16x32xf32>
    %19 = vector.extract_strided_slice %0 {offsets = [0, 0], sizes = [1, 32], strides = [1, 1]} : vector<24x128xf32> to vector<1x32xf32>
    %20 = vector.extract_strided_slice %0 {offsets = [1, 0], sizes = [1, 32], strides = [1, 1]} : vector<24x128xf32> to vector<1x32xf32>
    %cst_6 = arith.constant dense<0.000000e+00> : vector<16xf32>
    %21 = vector.multi_reduction <add>, %18, %cst_6 [1] : vector<16x32xf32> to vector<16xf32>
    %22 = vector.shape_cast %21 : vector<16xf32> to vector<16x1xf32>
    %cst_7 = arith.constant 3.200000e+01 : f32
    %23 = vector.broadcast %cst_7 : f32 to vector<16x1xf32>
    %24 = arith.divf %22, %23 : vector<16x1xf32>
    %25 = vector.broadcast %24 : vector<16x1xf32> to vector<16x32xf32>
    %26 = arith.subf %18, %25 : vector<16x32xf32>
    %27 = arith.mulf %26, %26 : vector<16x32xf32>
    %cst_8 = arith.constant dense<0.000000e+00> : vector<16xf32>
    %28 = vector.multi_reduction <add>, %27, %cst_8 [1] : vector<16x32xf32> to vector<16xf32>
    %29 = vector.shape_cast %28 : vector<16xf32> to vector<16x1xf32>
    %cst_9 = arith.constant 3.200000e+01 : f32
    %30 = vector.broadcast %cst_9 : f32 to vector<16x1xf32>
    %31 = arith.divf %29, %30 : vector<16x1xf32>
    %32 = vector.broadcast %24 : vector<16x1xf32> to vector<16x32xf32>
    %33 = arith.subf %18, %32 : vector<16x32xf32>
    %cst_10 = arith.constant 9.99999996E-13 : f32
    %34 = vector.broadcast %cst_10 : f32 to vector<16x1xf32>
    %35 = arith.addf %31, %34 : vector<16x1xf32>
    %36 = math.rsqrt %35 : vector<16x1xf32>
    %37 = vector.broadcast %36 : vector<16x1xf32> to vector<16x32xf32>
    %38 = arith.mulf %33, %37 : vector<16x32xf32>
    %39 = vector.broadcast %19 : vector<1x32xf32> to vector<16x32xf32>
    %40 = arith.mulf %38, %39 : vector<16x32xf32>
    %41 = vector.broadcast %20 : vector<1x32xf32> to vector<16x32xf32>
    %42 = arith.addf %40, %41 : vector<16x32xf32>
    %c0_11 = arith.constant 0 : index
    %c0_12 = arith.constant 0 : index
    %c0_13 = arith.constant 0 : index
    %43 = vector.load %arg2[%c0_11, %c0_12, %c0_13] : memref<2x32x96xbf16, #tpu.memory_space<vmem>>, vector<1x32x96xbf16>
    %44 = vector.shape_cast %43 : vector<1x32x96xbf16> to vector<32x96xbf16>
    %c0_14 = arith.constant 0 : index
    %c0_15 = arith.constant 0 : index
    %c0_16 = arith.constant 0 : index
    %45 = vector.load %arg3[%c0_14, %c0_15, %c0_16] : memref<2x32x32xbf16, #tpu.memory_space<vmem>>, vector<1x32x32xbf16>
    %46 = vector.shape_cast %45 : vector<1x32x32xbf16> to vector<32x32xbf16>
    %47 = arith.truncf %42 : vector<16x32xf32> to vector<16x32xbf16>
    %cst_17 = arith.constant dense<0.000000e+00> : vector<16x96xf32>
    %48 = tpu.matmul %47, %44, %cst_17 {dimension_numbers = #tpu.dot_dimension_numbers<[1], [0], [0], [1], [0, 0, 1, 1], [], []>} : vector<16x32xbf16>, vector<32x96xbf16>, vector<16x96xf32> -> vector<16x96xf32>
    %49 = vector.extract_strided_slice %0 {offsets = [8, 0], sizes = [1, 96], strides = [1, 1]} : vector<24x128xf32> to vector<1x96xf32>
    %50 = vector.broadcast %49 : vector<1x96xf32> to vector<16x96xf32>
    %51 = arith.addf %48, %50 : vector<16x96xf32>
    %cst_18 = arith.constant 0.000000e+00 : f32
    %52 = vector.broadcast %cst_18 : f32 to vector<16x32xf32>
    %53 = vector.extract_strided_slice %51 {offsets = [0, 0], sizes = [16, 8], strides = [1, 1]} : vector<16x96xf32> to vector<16x8xf32>
    %54 = vector.shape_cast %53 : vector<16x8xf32> to vector<2x8x8xf32>
    %55 = arith.truncf %54 : vector<2x8x8xf32> to vector<2x8x8xbf16>
    %56 = vector.extract_strided_slice %51 {offsets = [0, 32], sizes = [16, 8], strides = [1, 1]} : vector<16x96xf32> to vector<16x8xf32>
    %57 = vector.shape_cast %56 : vector<16x8xf32> to vector<2x8x8xf32>
    %58 = arith.truncf %57 : vector<2x8x8xf32> to vector<2x8x8xbf16>
    %59 = vector.extract_strided_slice %51 {offsets = [0, 64], sizes = [16, 8], strides = [1, 1]} : vector<16x96xf32> to vector<16x8xf32>
    %60 = vector.shape_cast %59 : vector<16x8xf32> to vector<2x8x8xf32>
    %61 = arith.truncf %60 : vector<2x8x8xf32> to vector<2x8x8xbf16>
    "tpu.trace_start"() <{level = 10 : i32, message = "bqd,bkd->bqk"}> : () -> ()
    %cst_19 = arith.constant dense<0.000000e+00> : vector<2x8x8xf32>
    %62 = tpu.matmul %55, %58, %cst_19 {dimension_numbers = #tpu.dot_dimension_numbers<[2], [2], [1], [1], [0, 0, 0, 1, 1, 1], [0], [0]>} : vector<2x8x8xbf16>, vector<2x8x8xbf16>, vector<2x8x8xf32> -> vector<2x8x8xf32>
    "tpu.trace_stop"() : () -> ()
    %cst_20 = arith.constant 0.353553385 : f32
    %63 = vector.broadcast %cst_20 : f32 to vector<2x8x8xf32>
    %64 = arith.mulf %62, %63 : vector<2x8x8xf32>
    %cst_21 = arith.constant dense<0xFF800000> : vector<2x8xf32>
    %65 = vector.multi_reduction <maximumf>, %64, %cst_21 [2] : vector<2x8x8xf32> to vector<2x8xf32>
    %66 = vector.shape_cast %65 : vector<2x8xf32> to vector<2x8x1xf32>
    %67 = vector.broadcast %66 : vector<2x8x1xf32> to vector<2x8x8xf32>
    %68 = arith.subf %64, %67 : vector<2x8x8xf32>
    %69 = math.exp %68 : vector<2x8x8xf32>
    %cst_22 = arith.constant dense<0.000000e+00> : vector<2x8xf32>
    %70 = vector.multi_reduction <add>, %69, %cst_22 [2] : vector<2x8x8xf32> to vector<2x8xf32>
    %71 = vector.shape_cast %70 : vector<2x8xf32> to vector<2x8x1xf32>
    %72 = tpu.reciprocal %71 {approx = true} : vector<2x8x1xf32> -> vector<2x8x1xf32>
    %73 = vector.broadcast %72 : vector<2x8x1xf32> to vector<2x8x8xf32>
    %74 = arith.mulf %69, %73 : vector<2x8x8xf32>
    %75 = arith.truncf %74 : vector<2x8x8xf32> to vector<2x8x8xbf16>
    "tpu.trace_start"() <{level = 10 : i32, message = "bqk,bkd->bqd"}> : () -> ()
    %cst_23 = arith.constant dense<0.000000e+00> : vector<2x8x8xf32>
    %76 = tpu.matmul %75, %61, %cst_23 {dimension_numbers = #tpu.dot_dimension_numbers<[2], [1], [1], [2], [0, 0, 0, 1, 1, 2], [0], [0]>} : vector<2x8x8xbf16>, vector<2x8x8xbf16>, vector<2x8x8xf32> -> vector<2x8x8xf32>
    "tpu.trace_stop"() : () -> ()
    %77 = vector.shape_cast %76 : vector<2x8x8xf32> to vector<16x8xf32>
    %78 = vector.extract_strided_slice %46 {offsets = [0, 0], sizes = [8, 32], strides = [1, 1]} : vector<32x32xbf16> to vector<8x32xbf16>
    %79 = arith.truncf %77 : vector<16x8xf32> to vector<16x8xbf16>
    %cst_24 = arith.constant dense<0.000000e+00> : vector<16x32xf32>
    %80 = tpu.matmul %79, %78, %cst_24 {dimension_numbers = #tpu.dot_dimension_numbers<[1], [0], [0], [1], [0, 0, 1, 1], [], []>} : vector<16x8xbf16>, vector<8x32xbf16>, vector<16x32xf32> -> vector<16x32xf32>
    %81 = arith.addf %52, %80 : vector<16x32xf32>
    %82 = vector.extract_strided_slice %51 {offsets = [0, 8], sizes = [16, 8], strides = [1, 1]} : vector<16x96xf32> to vector<16x8xf32>
    %83 = vector.shape_cast %82 : vector<16x8xf32> to vector<2x8x8xf32>
    %84 = arith.truncf %83 : vector<2x8x8xf32> to vector<2x8x8xbf16>
    %85 = vector.extract_strided_slice %51 {offsets = [0, 40], sizes = [16, 8], strides = [1, 1]} : vector<16x96xf32> to vector<16x8xf32>
    %86 = vector.shape_cast %85 : vector<16x8xf32> to vector<2x8x8xf32>
    %87 = arith.truncf %86 : vector<2x8x8xf32> to vector<2x8x8xbf16>
    %88 = vector.extract_strided_slice %51 {offsets = [0, 72], sizes = [16, 8], strides = [1, 1]} : vector<16x96xf32> to vector<16x8xf32>
    %89 = vector.shape_cast %88 : vector<16x8xf32> to vector<2x8x8xf32>
    %90 = arith.truncf %89 : vector<2x8x8xf32> to vector<2x8x8xbf16>
    "tpu.trace_start"() <{level = 10 : i32, message = "bqd,bkd->bqk"}> : () -> ()
    %cst_25 = arith.constant dense<0.000000e+00> : vector<2x8x8xf32>
    %91 = tpu.matmul %84, %87, %cst_25 {dimension_numbers = #tpu.dot_dimension_numbers<[2], [2], [1], [1], [0, 0, 0, 1, 1, 1], [0], [0]>} : vector<2x8x8xbf16>, vector<2x8x8xbf16>, vector<2x8x8xf32> -> vector<2x8x8xf32>
    "tpu.trace_stop"() : () -> ()
    %cst_26 = arith.constant 0.353553385 : f32
    %92 = vector.broadcast %cst_26 : f32 to vector<2x8x8xf32>
    %93 = arith.mulf %91, %92 : vector<2x8x8xf32>
    %cst_27 = arith.constant dense<0xFF800000> : vector<2x8xf32>
    %94 = vector.multi_reduction <maximumf>, %93, %cst_27 [2] : vector<2x8x8xf32> to vector<2x8xf32>
    %95 = vector.shape_cast %94 : vector<2x8xf32> to vector<2x8x1xf32>
    %96 = vector.broadcast %95 : vector<2x8x1xf32> to vector<2x8x8xf32>
    %97 = arith.subf %93, %96 : vector<2x8x8xf32>
    %98 = math.exp %97 : vector<2x8x8xf32>
    %cst_28 = arith.constant dense<0.000000e+00> : vector<2x8xf32>
    %99 = vector.multi_reduction <add>, %98, %cst_28 [2] : vector<2x8x8xf32> to vector<2x8xf32>
    %100 = vector.shape_cast %99 : vector<2x8xf32> to vector<2x8x1xf32>
    %101 = tpu.reciprocal %100 {approx = true} : vector<2x8x1xf32> -> vector<2x8x1xf32>
    %102 = vector.broadcast %101 : vector<2x8x1xf32> to vector<2x8x8xf32>
    %103 = arith.mulf %98, %102 : vector<2x8x8xf32>
    %104 = arith.truncf %103 : vector<2x8x8xf32> to vector<2x8x8xbf16>
    "tpu.trace_start"() <{level = 10 : i32, message = "bqk,bkd->bqd"}> : () -> ()
    %cst_29 = arith.constant dense<0.000000e+00> : vector<2x8x8xf32>
    %105 = tpu.matmul %104, %90, %cst_29 {dimension_numbers = #tpu.dot_dimension_numbers<[2], [1], [1], [2], [0, 0, 0, 1, 1, 2], [0], [0]>} : vector<2x8x8xbf16>, vector<2x8x8xbf16>, vector<2x8x8xf32> -> vector<2x8x8xf32>
    "tpu.trace_stop"() : () -> ()
    %106 = vector.shape_cast %105 : vector<2x8x8xf32> to vector<16x8xf32>
    %107 = vector.extract_strided_slice %46 {offsets = [8, 0], sizes = [8, 32], strides = [1, 1]} : vector<32x32xbf16> to vector<8x32xbf16>
    %108 = arith.truncf %106 : vector<16x8xf32> to vector<16x8xbf16>
    %cst_30 = arith.constant dense<0.000000e+00> : vector<16x32xf32>
    %109 = tpu.matmul %108, %107, %cst_30 {dimension_numbers = #tpu.dot_dimension_numbers<[1], [0], [0], [1], [0, 0, 1, 1], [], []>} : vector<16x8xbf16>, vector<8x32xbf16>, vector<16x32xf32> -> vector<16x32xf32>
    %110 = arith.addf %81, %109 : vector<16x32xf32>
    %111 = vector.extract_strided_slice %51 {offsets = [0, 16], sizes = [16, 8], strides = [1, 1]} : vector<16x96xf32> to vector<16x8xf32>
    %112 = vector.shape_cast %111 : vector<16x8xf32> to vector<2x8x8xf32>
    %113 = arith.truncf %112 : vector<2x8x8xf32> to vector<2x8x8xbf16>
    %114 = vector.extract_strided_slice %51 {offsets = [0, 48], sizes = [16, 8], strides = [1, 1]} : vector<16x96xf32> to vector<16x8xf32>
    %115 = vector.shape_cast %114 : vector<16x8xf32> to vector<2x8x8xf32>
    %116 = arith.truncf %115 : vector<2x8x8xf32> to vector<2x8x8xbf16>
    %117 = vector.extract_strided_slice %51 {offsets = [0, 80], sizes = [16, 8], strides = [1, 1]} : vector<16x96xf32> to vector<16x8xf32>
    %118 = vector.shape_cast %117 : vector<16x8xf32> to vector<2x8x8xf32>
    %119 = arith.truncf %118 : vector<2x8x8xf32> to vector<2x8x8xbf16>
    "tpu.trace_start"() <{level = 10 : i32, message = "bqd,bkd->bqk"}> : () -> ()
    %cst_31 = arith.constant dense<0.000000e+00> : vector<2x8x8xf32>
    %120 = tpu.matmul %113, %116, %cst_31 {dimension_numbers = #tpu.dot_dimension_numbers<[2], [2], [1], [1], [0, 0, 0, 1, 1, 1], [0], [0]>} : vector<2x8x8xbf16>, vector<2x8x8xbf16>, vector<2x8x8xf32> -> vector<2x8x8xf32>
    "tpu.trace_stop"() : () -> ()
    %cst_32 = arith.constant 0.353553385 : f32
    %121 = vector.broadcast %cst_32 : f32 to vector<2x8x8xf32>
    %122 = arith.mulf %120, %121 : vector<2x8x8xf32>
    %cst_33 = arith.constant dense<0xFF800000> : vector<2x8xf32>
    %123 = vector.multi_reduction <maximumf>, %122, %cst_33 [2] : vector<2x8x8xf32> to vector<2x8xf32>
    %124 = vector.shape_cast %123 : vector<2x8xf32> to vector<2x8x1xf32>
    %125 = vector.broadcast %124 : vector<2x8x1xf32> to vector<2x8x8xf32>
    %126 = arith.subf %122, %125 : vector<2x8x8xf32>
    %127 = math.exp %126 : vector<2x8x8xf32>
    %cst_34 = arith.constant dense<0.000000e+00> : vector<2x8xf32>
    %128 = vector.multi_reduction <add>, %127, %cst_34 [2] : vector<2x8x8xf32> to vector<2x8xf32>
    %129 = vector.shape_cast %128 : vector<2x8xf32> to vector<2x8x1xf32>
    %130 = tpu.reciprocal %129 {approx = true} : vector<2x8x1xf32> -> vector<2x8x1xf32>
    %131 = vector.broadcast %130 : vector<2x8x1xf32> to vector<2x8x8xf32>
    %132 = arith.mulf %127, %131 : vector<2x8x8xf32>
    %133 = arith.truncf %132 : vector<2x8x8xf32> to vector<2x8x8xbf16>
    "tpu.trace_start"() <{level = 10 : i32, message = "bqk,bkd->bqd"}> : () -> ()
    %cst_35 = arith.constant dense<0.000000e+00> : vector<2x8x8xf32>
    %134 = tpu.matmul %133, %119, %cst_35 {dimension_numbers = #tpu.dot_dimension_numbers<[2], [1], [1], [2], [0, 0, 0, 1, 1, 2], [0], [0]>} : vector<2x8x8xbf16>, vector<2x8x8xbf16>, vector<2x8x8xf32> -> vector<2x8x8xf32>
    "tpu.trace_stop"() : () -> ()
    %135 = vector.shape_cast %134 : vector<2x8x8xf32> to vector<16x8xf32>
    %136 = vector.extract_strided_slice %46 {offsets = [16, 0], sizes = [8, 32], strides = [1, 1]} : vector<32x32xbf16> to vector<8x32xbf16>
    %137 = arith.truncf %135 : vector<16x8xf32> to vector<16x8xbf16>
    %cst_36 = arith.constant dense<0.000000e+00> : vector<16x32xf32>
    %138 = tpu.matmul %137, %136, %cst_36 {dimension_numbers = #tpu.dot_dimension_numbers<[1], [0], [0], [1], [0, 0, 1, 1], [], []>} : vector<16x8xbf16>, vector<8x32xbf16>, vector<16x32xf32> -> vector<16x32xf32>
    %139 = arith.addf %110, %138 : vector<16x32xf32>
    %140 = vector.extract_strided_slice %51 {offsets = [0, 24], sizes = [16, 8], strides = [1, 1]} : vector<16x96xf32> to vector<16x8xf32>
    %141 = vector.shape_cast %140 : vector<16x8xf32> to vector<2x8x8xf32>
    %142 = arith.truncf %141 : vector<2x8x8xf32> to vector<2x8x8xbf16>
    %143 = vector.extract_strided_slice %51 {offsets = [0, 56], sizes = [16, 8], strides = [1, 1]} : vector<16x96xf32> to vector<16x8xf32>
    %144 = vector.shape_cast %143 : vector<16x8xf32> to vector<2x8x8xf32>
    %145 = arith.truncf %144 : vector<2x8x8xf32> to vector<2x8x8xbf16>
    %146 = vector.extract_strided_slice %51 {offsets = [0, 88], sizes = [16, 8], strides = [1, 1]} : vector<16x96xf32> to vector<16x8xf32>
    %147 = vector.shape_cast %146 : vector<16x8xf32> to vector<2x8x8xf32>
    %148 = arith.truncf %147 : vector<2x8x8xf32> to vector<2x8x8xbf16>
    "tpu.trace_start"() <{level = 10 : i32, message = "bqd,bkd->bqk"}> : () -> ()
    %cst_37 = arith.constant dense<0.000000e+00> : vector<2x8x8xf32>
    %149 = tpu.matmul %142, %145, %cst_37 {dimension_numbers = #tpu.dot_dimension_numbers<[2], [2], [1], [1], [0, 0, 0, 1, 1, 1], [0], [0]>} : vector<2x8x8xbf16>, vector<2x8x8xbf16>, vector<2x8x8xf32> -> vector<2x8x8xf32>
    "tpu.trace_stop"() : () -> ()
    %cst_38 = arith.constant 0.353553385 : f32
    %150 = vector.broadcast %cst_38 : f32 to vector<2x8x8xf32>
    %151 = arith.mulf %149, %150 : vector<2x8x8xf32>
    %cst_39 = arith.constant dense<0xFF800000> : vector<2x8xf32>
    %152 = vector.multi_reduction <maximumf>, %151, %cst_39 [2] : vector<2x8x8xf32> to vector<2x8xf32>
    %153 = vector.shape_cast %152 : vector<2x8xf32> to vector<2x8x1xf32>
    %154 = vector.broadcast %153 : vector<2x8x1xf32> to vector<2x8x8xf32>
    %155 = arith.subf %151, %154 : vector<2x8x8xf32>
    %156 = math.exp %155 : vector<2x8x8xf32>
    %cst_40 = arith.constant dense<0.000000e+00> : vector<2x8xf32>
    %157 = vector.multi_reduction <add>, %156, %cst_40 [2] : vector<2x8x8xf32> to vector<2x8xf32>
    %158 = vector.shape_cast %157 : vector<2x8xf32> to vector<2x8x1xf32>
    %159 = tpu.reciprocal %158 {approx = true} : vector<2x8x1xf32> -> vector<2x8x1xf32>
    %160 = vector.broadcast %159 : vector<2x8x1xf32> to vector<2x8x8xf32>
    %161 = arith.mulf %156, %160 : vector<2x8x8xf32>
    %162 = arith.truncf %161 : vector<2x8x8xf32> to vector<2x8x8xbf16>
    "tpu.trace_start"() <{level = 10 : i32, message = "bqk,bkd->bqd"}> : () -> ()
    %cst_41 = arith.constant dense<0.000000e+00> : vector<2x8x8xf32>
    %163 = tpu.matmul %162, %148, %cst_41 {dimension_numbers = #tpu.dot_dimension_numbers<[2], [1], [1], [2], [0, 0, 0, 1, 1, 2], [0], [0]>} : vector<2x8x8xbf16>, vector<2x8x8xbf16>, vector<2x8x8xf32> -> vector<2x8x8xf32>
    "tpu.trace_stop"() : () -> ()
    %164 = vector.shape_cast %163 : vector<2x8x8xf32> to vector<16x8xf32>
    %165 = vector.extract_strided_slice %46 {offsets = [24, 0], sizes = [8, 32], strides = [1, 1]} : vector<32x32xbf16> to vector<8x32xbf16>
    %166 = arith.truncf %164 : vector<16x8xf32> to vector<16x8xbf16>
    %cst_42 = arith.constant dense<0.000000e+00> : vector<16x32xf32>
    %167 = tpu.matmul %166, %165, %cst_42 {dimension_numbers = #tpu.dot_dimension_numbers<[1], [0], [0], [1], [0, 0, 1, 1], [], []>} : vector<16x8xbf16>, vector<8x32xbf16>, vector<16x32xf32> -> vector<16x32xf32>
    %168 = arith.addf %139, %167 : vector<16x32xf32>
    %169 = vector.extract_strided_slice %0 {offsets = [9, 0], sizes = [1, 32], strides = [1, 1]} : vector<24x128xf32> to vector<1x32xf32>
    %170 = vector.broadcast %169 : vector<1x32xf32> to vector<16x32xf32>
    %171 = arith.addf %168, %170 : vector<16x32xf32>
    %172 = arith.addf %171, %42 : vector<16x32xf32>
    %173 = vector.extract_strided_slice %0 {offsets = [10, 0], sizes = [1, 32], strides = [1, 1]} : vector<24x128xf32> to vector<1x32xf32>
    %174 = vector.extract_strided_slice %0 {offsets = [11, 0], sizes = [1, 32], strides = [1, 1]} : vector<24x128xf32> to vector<1x32xf32>
    %cst_43 = arith.constant dense<0.000000e+00> : vector<16xf32>
    %175 = vector.multi_reduction <add>, %172, %cst_43 [1] : vector<16x32xf32> to vector<16xf32>
    %176 = vector.shape_cast %175 : vector<16xf32> to vector<16x1xf32>
    %cst_44 = arith.constant 3.200000e+01 : f32
    %177 = vector.broadcast %cst_44 : f32 to vector<16x1xf32>
    %178 = arith.divf %176, %177 : vector<16x1xf32>
    %179 = vector.broadcast %178 : vector<16x1xf32> to vector<16x32xf32>
    %180 = arith.subf %172, %179 : vector<16x32xf32>
    %181 = arith.mulf %180, %180 : vector<16x32xf32>
    %cst_45 = arith.constant dense<0.000000e+00> : vector<16xf32>
    %182 = vector.multi_reduction <add>, %181, %cst_45 [1] : vector<16x32xf32> to vector<16xf32>
    %183 = vector.shape_cast %182 : vector<16xf32> to vector<16x1xf32>
    %cst_46 = arith.constant 3.200000e+01 : f32
    %184 = vector.broadcast %cst_46 : f32 to vector<16x1xf32>
    %185 = arith.divf %183, %184 : vector<16x1xf32>
    %186 = vector.broadcast %178 : vector<16x1xf32> to vector<16x32xf32>
    %187 = arith.subf %172, %186 : vector<16x32xf32>
    %cst_47 = arith.constant 9.99999996E-13 : f32
    %188 = vector.broadcast %cst_47 : f32 to vector<16x1xf32>
    %189 = arith.addf %185, %188 : vector<16x1xf32>
    %190 = math.rsqrt %189 : vector<16x1xf32>
    %191 = vector.broadcast %190 : vector<16x1xf32> to vector<16x32xf32>
    %192 = arith.mulf %187, %191 : vector<16x32xf32>
    %193 = vector.broadcast %173 : vector<1x32xf32> to vector<16x32xf32>
    %194 = arith.mulf %192, %193 : vector<16x32xf32>
    %195 = vector.broadcast %174 : vector<1x32xf32> to vector<16x32xf32>
    %196 = arith.addf %194, %195 : vector<16x32xf32>
    %c0_48 = arith.constant 0 : index
    %c0_49 = arith.constant 0 : index
    %c0_50 = arith.constant 0 : index
    %197 = vector.load %arg4[%c0_48, %c0_49, %c0_50] : memref<2x32x128xbf16, #tpu.memory_space<vmem>>, vector<1x32x128xbf16>
    %198 = vector.shape_cast %197 : vector<1x32x128xbf16> to vector<32x128xbf16>
    %199 = arith.truncf %196 : vector<16x32xf32> to vector<16x32xbf16>
    %cst_51 = arith.constant dense<0.000000e+00> : vector<16x128xf32>
    %200 = tpu.matmul %199, %198, %cst_51 {dimension_numbers = #tpu.dot_dimension_numbers<[1], [0], [0], [1], [0, 0, 1, 1], [], []>} : vector<16x32xbf16>, vector<32x128xbf16>, vector<16x128xf32> -> vector<16x128xf32>
    %201 = vector.extract_strided_slice %0 {offsets = [12, 0], sizes = [1, 128], strides = [1, 1]} : vector<24x128xf32> to vector<1x128xf32>
    %202 = vector.broadcast %201 : vector<1x128xf32> to vector<16x128xf32>
    %203 = arith.addf %200, %202 : vector<16x128xf32>
    %cst_52 = arith.constant 5.000000e-01 : f32
    %204 = vector.broadcast %cst_52 : f32 to vector<16x128xf32>
    %205 = arith.mulf %204, %203 : vector<16x128xf32>
    %cst_53 = arith.constant 0.707106769 : f32
    %206 = vector.broadcast %cst_53 : f32 to vector<16x128xf32>
    %207 = arith.mulf %203, %206 : vector<16x128xf32>
    %208 = math.erf %207 : vector<16x128xf32>
    %cst_54 = arith.constant 1.000000e+00 : f32
    %209 = vector.broadcast %cst_54 : f32 to vector<16x128xf32>
    %210 = arith.addf %209, %208 : vector<16x128xf32>
    %211 = arith.mulf %205, %210 : vector<16x128xf32>
    %c0_55 = arith.constant 0 : index
    %c0_56 = arith.constant 0 : index
    %c0_57 = arith.constant 0 : index
    %212 = vector.load %arg5[%c0_55, %c0_56, %c0_57] : memref<2x128x32xbf16, #tpu.memory_space<vmem>>, vector<1x128x32xbf16>
    %213 = vector.shape_cast %212 : vector<1x128x32xbf16> to vector<128x32xbf16>
    %214 = arith.truncf %211 : vector<16x128xf32> to vector<16x128xbf16>
    %cst_58 = arith.constant dense<0.000000e+00> : vector<16x32xf32>
    %215 = tpu.matmul %214, %213, %cst_58 {dimension_numbers = #tpu.dot_dimension_numbers<[1], [0], [0], [1], [0, 0, 1, 1], [], []>} : vector<16x128xbf16>, vector<128x32xbf16>, vector<16x32xf32> -> vector<16x32xf32>
    %216 = vector.extract_strided_slice %0 {offsets = [13, 0], sizes = [1, 32], strides = [1, 1]} : vector<24x128xf32> to vector<1x32xf32>
    %217 = vector.broadcast %216 : vector<1x32xf32> to vector<16x32xf32>
    %218 = arith.addf %215, %217 : vector<16x32xf32>
    %219 = arith.addf %218, %196 : vector<16x32xf32>
    %220 = vector.extract_strided_slice %0 {offsets = [14, 0], sizes = [1, 32], strides = [1, 1]} : vector<24x128xf32> to vector<1x32xf32>
    %221 = vector.extract_strided_slice %0 {offsets = [15, 0], sizes = [1, 32], strides = [1, 1]} : vector<24x128xf32> to vector<1x32xf32>
    %cst_59 = arith.constant dense<0.000000e+00> : vector<16xf32>
    %222 = vector.multi_reduction <add>, %219, %cst_59 [1] : vector<16x32xf32> to vector<16xf32>
    %223 = vector.shape_cast %222 : vector<16xf32> to vector<16x1xf32>
    %cst_60 = arith.constant 3.200000e+01 : f32
    %224 = vector.broadcast %cst_60 : f32 to vector<16x1xf32>
    %225 = arith.divf %223, %224 : vector<16x1xf32>
    %226 = vector.broadcast %225 : vector<16x1xf32> to vector<16x32xf32>
    %227 = arith.subf %219, %226 : vector<16x32xf32>
    %228 = arith.mulf %227, %227 : vector<16x32xf32>
    %cst_61 = arith.constant dense<0.000000e+00> : vector<16xf32>
    %229 = vector.multi_reduction <add>, %228, %cst_61 [1] : vector<16x32xf32> to vector<16xf32>
    %230 = vector.shape_cast %229 : vector<16xf32> to vector<16x1xf32>
    %cst_62 = arith.constant 3.200000e+01 : f32
    %231 = vector.broadcast %cst_62 : f32 to vector<16x1xf32>
    %232 = arith.divf %230, %231 : vector<16x1xf32>
    %233 = vector.broadcast %225 : vector<16x1xf32> to vector<16x32xf32>
    %234 = arith.subf %219, %233 : vector<16x32xf32>
    %cst_63 = arith.constant 9.99999996E-13 : f32
    %235 = vector.broadcast %cst_63 : f32 to vector<16x1xf32>
    %236 = arith.addf %232, %235 : vector<16x1xf32>
    %237 = math.rsqrt %236 : vector<16x1xf32>
    %238 = vector.broadcast %237 : vector<16x1xf32> to vector<16x32xf32>
    %239 = arith.mulf %234, %238 : vector<16x32xf32>
    %240 = vector.broadcast %220 : vector<1x32xf32> to vector<16x32xf32>
    %241 = arith.mulf %239, %240 : vector<16x32xf32>
    %242 = vector.broadcast %221 : vector<1x32xf32> to vector<16x32xf32>
    %243 = arith.addf %241, %242 : vector<16x32xf32>
    %c1 = arith.constant 1 : index
    %c0_64 = arith.constant 0 : index
    %c0_65 = arith.constant 0 : index
    %244 = vector.load %arg2[%c1, %c0_64, %c0_65] : memref<2x32x96xbf16, #tpu.memory_space<vmem>>, vector<1x32x96xbf16>
    %245 = vector.shape_cast %244 : vector<1x32x96xbf16> to vector<32x96xbf16>
    %c1_66 = arith.constant 1 : index
    %c0_67 = arith.constant 0 : index
    %c0_68 = arith.constant 0 : index
    %246 = vector.load %arg3[%c1_66, %c0_67, %c0_68] : memref<2x32x32xbf16, #tpu.memory_space<vmem>>, vector<1x32x32xbf16>
    %247 = vector.shape_cast %246 : vector<1x32x32xbf16> to vector<32x32xbf16>
    %248 = arith.truncf %243 : vector<16x32xf32> to vector<16x32xbf16>
    %cst_69 = arith.constant dense<0.000000e+00> : vector<16x96xf32>
    %249 = tpu.matmul %248, %245, %cst_69 {dimension_numbers = #tpu.dot_dimension_numbers<[1], [0], [0], [1], [0, 0, 1, 1], [], []>} : vector<16x32xbf16>, vector<32x96xbf16>, vector<16x96xf32> -> vector<16x96xf32>
    %250 = vector.extract_strided_slice %0 {offsets = [16, 0], sizes = [1, 96], strides = [1, 1]} : vector<24x128xf32> to vector<1x96xf32>
    %251 = vector.broadcast %250 : vector<1x96xf32> to vector<16x96xf32>
    %252 = arith.addf %249, %251 : vector<16x96xf32>
    %cst_70 = arith.constant 0.000000e+00 : f32
    %253 = vector.broadcast %cst_70 : f32 to vector<16x32xf32>
    %254 = vector.extract_strided_slice %252 {offsets = [0, 0], sizes = [16, 8], strides = [1, 1]} : vector<16x96xf32> to vector<16x8xf32>
    %255 = vector.shape_cast %254 : vector<16x8xf32> to vector<2x8x8xf32>
    %256 = arith.truncf %255 : vector<2x8x8xf32> to vector<2x8x8xbf16>
    %257 = vector.extract_strided_slice %252 {offsets = [0, 32], sizes = [16, 8], strides = [1, 1]} : vector<16x96xf32> to vector<16x8xf32>
    %258 = vector.shape_cast %257 : vector<16x8xf32> to vector<2x8x8xf32>
    %259 = arith.truncf %258 : vector<2x8x8xf32> to vector<2x8x8xbf16>
    %260 = vector.extract_strided_slice %252 {offsets = [0, 64], sizes = [16, 8], strides = [1, 1]} : vector<16x96xf32> to vector<16x8xf32>
    %261 = vector.shape_cast %260 : vector<16x8xf32> to vector<2x8x8xf32>
    %262 = arith.truncf %261 : vector<2x8x8xf32> to vector<2x8x8xbf16>
    "tpu.trace_start"() <{level = 10 : i32, message = "bqd,bkd->bqk"}> : () -> ()
    %cst_71 = arith.constant dense<0.000000e+00> : vector<2x8x8xf32>
    %263 = tpu.matmul %256, %259, %cst_71 {dimension_numbers = #tpu.dot_dimension_numbers<[2], [2], [1], [1], [0, 0, 0, 1, 1, 1], [0], [0]>} : vector<2x8x8xbf16>, vector<2x8x8xbf16>, vector<2x8x8xf32> -> vector<2x8x8xf32>
    "tpu.trace_stop"() : () -> ()
    %cst_72 = arith.constant 0.353553385 : f32
    %264 = vector.broadcast %cst_72 : f32 to vector<2x8x8xf32>
    %265 = arith.mulf %263, %264 : vector<2x8x8xf32>
    %cst_73 = arith.constant dense<0xFF800000> : vector<2x8xf32>
    %266 = vector.multi_reduction <maximumf>, %265, %cst_73 [2] : vector<2x8x8xf32> to vector<2x8xf32>
    %267 = vector.shape_cast %266 : vector<2x8xf32> to vector<2x8x1xf32>
    %268 = vector.broadcast %267 : vector<2x8x1xf32> to vector<2x8x8xf32>
    %269 = arith.subf %265, %268 : vector<2x8x8xf32>
    %270 = math.exp %269 : vector<2x8x8xf32>
    %cst_74 = arith.constant dense<0.000000e+00> : vector<2x8xf32>
    %271 = vector.multi_reduction <add>, %270, %cst_74 [2] : vector<2x8x8xf32> to vector<2x8xf32>
    %272 = vector.shape_cast %271 : vector<2x8xf32> to vector<2x8x1xf32>
    %273 = tpu.reciprocal %272 {approx = true} : vector<2x8x1xf32> -> vector<2x8x1xf32>
    %274 = vector.broadcast %273 : vector<2x8x1xf32> to vector<2x8x8xf32>
    %275 = arith.mulf %270, %274 : vector<2x8x8xf32>
    %276 = arith.truncf %275 : vector<2x8x8xf32> to vector<2x8x8xbf16>
    "tpu.trace_start"() <{level = 10 : i32, message = "bqk,bkd->bqd"}> : () -> ()
    %cst_75 = arith.constant dense<0.000000e+00> : vector<2x8x8xf32>
    %277 = tpu.matmul %276, %262, %cst_75 {dimension_numbers = #tpu.dot_dimension_numbers<[2], [1], [1], [2], [0, 0, 0, 1, 1, 2], [0], [0]>} : vector<2x8x8xbf16>, vector<2x8x8xbf16>, vector<2x8x8xf32> -> vector<2x8x8xf32>
    "tpu.trace_stop"() : () -> ()
    %278 = vector.shape_cast %277 : vector<2x8x8xf32> to vector<16x8xf32>
    %279 = vector.extract_strided_slice %247 {offsets = [0, 0], sizes = [8, 32], strides = [1, 1]} : vector<32x32xbf16> to vector<8x32xbf16>
    %280 = arith.truncf %278 : vector<16x8xf32> to vector<16x8xbf16>
    %cst_76 = arith.constant dense<0.000000e+00> : vector<16x32xf32>
    %281 = tpu.matmul %280, %279, %cst_76 {dimension_numbers = #tpu.dot_dimension_numbers<[1], [0], [0], [1], [0, 0, 1, 1], [], []>} : vector<16x8xbf16>, vector<8x32xbf16>, vector<16x32xf32> -> vector<16x32xf32>
    %282 = arith.addf %253, %281 : vector<16x32xf32>
    %283 = vector.extract_strided_slice %252 {offsets = [0, 8], sizes = [16, 8], strides = [1, 1]} : vector<16x96xf32> to vector<16x8xf32>
    %284 = vector.shape_cast %283 : vector<16x8xf32> to vector<2x8x8xf32>
    %285 = arith.truncf %284 : vector<2x8x8xf32> to vector<2x8x8xbf16>
    %286 = vector.extract_strided_slice %252 {offsets = [0, 40], sizes = [16, 8], strides = [1, 1]} : vector<16x96xf32> to vector<16x8xf32>
    %287 = vector.shape_cast %286 : vector<16x8xf32> to vector<2x8x8xf32>
    %288 = arith.truncf %287 : vector<2x8x8xf32> to vector<2x8x8xbf16>
    %289 = vector.extract_strided_slice %252 {offsets = [0, 72], sizes = [16, 8], strides = [1, 1]} : vector<16x96xf32> to vector<16x8xf32>
    %290 = vector.shape_cast %289 : vector<16x8xf32> to vector<2x8x8xf32>
    %291 = arith.truncf %290 : vector<2x8x8xf32> to vector<2x8x8xbf16>
    "tpu.trace_start"() <{level = 10 : i32, message = "bqd,bkd->bqk"}> : () -> ()
    %cst_77 = arith.constant dense<0.000000e+00> : vector<2x8x8xf32>
    %292 = tpu.matmul %285, %288, %cst_77 {dimension_numbers = #tpu.dot_dimension_numbers<[2], [2], [1], [1], [0, 0, 0, 1, 1, 1], [0], [0]>} : vector<2x8x8xbf16>, vector<2x8x8xbf16>, vector<2x8x8xf32> -> vector<2x8x8xf32>
    "tpu.trace_stop"() : () -> ()
    %cst_78 = arith.constant 0.353553385 : f32
    %293 = vector.broadcast %cst_78 : f32 to vector<2x8x8xf32>
    %294 = arith.mulf %292, %293 : vector<2x8x8xf32>
    %cst_79 = arith.constant dense<0xFF800000> : vector<2x8xf32>
    %295 = vector.multi_reduction <maximumf>, %294, %cst_79 [2] : vector<2x8x8xf32> to vector<2x8xf32>
    %296 = vector.shape_cast %295 : vector<2x8xf32> to vector<2x8x1xf32>
    %297 = vector.broadcast %296 : vector<2x8x1xf32> to vector<2x8x8xf32>
    %298 = arith.subf %294, %297 : vector<2x8x8xf32>
    %299 = math.exp %298 : vector<2x8x8xf32>
    %cst_80 = arith.constant dense<0.000000e+00> : vector<2x8xf32>
    %300 = vector.multi_reduction <add>, %299, %cst_80 [2] : vector<2x8x8xf32> to vector<2x8xf32>
    %301 = vector.shape_cast %300 : vector<2x8xf32> to vector<2x8x1xf32>
    %302 = tpu.reciprocal %301 {approx = true} : vector<2x8x1xf32> -> vector<2x8x1xf32>
    %303 = vector.broadcast %302 : vector<2x8x1xf32> to vector<2x8x8xf32>
    %304 = arith.mulf %299, %303 : vector<2x8x8xf32>
    %305 = arith.truncf %304 : vector<2x8x8xf32> to vector<2x8x8xbf16>
    "tpu.trace_start"() <{level = 10 : i32, message = "bqk,bkd->bqd"}> : () -> ()
    %cst_81 = arith.constant dense<0.000000e+00> : vector<2x8x8xf32>
    %306 = tpu.matmul %305, %291, %cst_81 {dimension_numbers = #tpu.dot_dimension_numbers<[2], [1], [1], [2], [0, 0, 0, 1, 1, 2], [0], [0]>} : vector<2x8x8xbf16>, vector<2x8x8xbf16>, vector<2x8x8xf32> -> vector<2x8x8xf32>
    "tpu.trace_stop"() : () -> ()
    %307 = vector.shape_cast %306 : vector<2x8x8xf32> to vector<16x8xf32>
    %308 = vector.extract_strided_slice %247 {offsets = [8, 0], sizes = [8, 32], strides = [1, 1]} : vector<32x32xbf16> to vector<8x32xbf16>
    %309 = arith.truncf %307 : vector<16x8xf32> to vector<16x8xbf16>
    %cst_82 = arith.constant dense<0.000000e+00> : vector<16x32xf32>
    %310 = tpu.matmul %309, %308, %cst_82 {dimension_numbers = #tpu.dot_dimension_numbers<[1], [0], [0], [1], [0, 0, 1, 1], [], []>} : vector<16x8xbf16>, vector<8x32xbf16>, vector<16x32xf32> -> vector<16x32xf32>
    %311 = arith.addf %282, %310 : vector<16x32xf32>
    %312 = vector.extract_strided_slice %252 {offsets = [0, 16], sizes = [16, 8], strides = [1, 1]} : vector<16x96xf32> to vector<16x8xf32>
    %313 = vector.shape_cast %312 : vector<16x8xf32> to vector<2x8x8xf32>
    %314 = arith.truncf %313 : vector<2x8x8xf32> to vector<2x8x8xbf16>
    %315 = vector.extract_strided_slice %252 {offsets = [0, 48], sizes = [16, 8], strides = [1, 1]} : vector<16x96xf32> to vector<16x8xf32>
    %316 = vector.shape_cast %315 : vector<16x8xf32> to vector<2x8x8xf32>
    %317 = arith.truncf %316 : vector<2x8x8xf32> to vector<2x8x8xbf16>
    %318 = vector.extract_strided_slice %252 {offsets = [0, 80], sizes = [16, 8], strides = [1, 1]} : vector<16x96xf32> to vector<16x8xf32>
    %319 = vector.shape_cast %318 : vector<16x8xf32> to vector<2x8x8xf32>
    %320 = arith.truncf %319 : vector<2x8x8xf32> to vector<2x8x8xbf16>
    "tpu.trace_start"() <{level = 10 : i32, message = "bqd,bkd->bqk"}> : () -> ()
    %cst_83 = arith.constant dense<0.000000e+00> : vector<2x8x8xf32>
    %321 = tpu.matmul %314, %317, %cst_83 {dimension_numbers = #tpu.dot_dimension_numbers<[2], [2], [1], [1], [0, 0, 0, 1, 1, 1], [0], [0]>} : vector<2x8x8xbf16>, vector<2x8x8xbf16>, vector<2x8x8xf32> -> vector<2x8x8xf32>
    "tpu.trace_stop"() : () -> ()
    %cst_84 = arith.constant 0.353553385 : f32
    %322 = vector.broadcast %cst_84 : f32 to vector<2x8x8xf32>
    %323 = arith.mulf %321, %322 : vector<2x8x8xf32>
    %cst_85 = arith.constant dense<0xFF800000> : vector<2x8xf32>
    %324 = vector.multi_reduction <maximumf>, %323, %cst_85 [2] : vector<2x8x8xf32> to vector<2x8xf32>
    %325 = vector.shape_cast %324 : vector<2x8xf32> to vector<2x8x1xf32>
    %326 = vector.broadcast %325 : vector<2x8x1xf32> to vector<2x8x8xf32>
    %327 = arith.subf %323, %326 : vector<2x8x8xf32>
    %328 = math.exp %327 : vector<2x8x8xf32>
    %cst_86 = arith.constant dense<0.000000e+00> : vector<2x8xf32>
    %329 = vector.multi_reduction <add>, %328, %cst_86 [2] : vector<2x8x8xf32> to vector<2x8xf32>
    %330 = vector.shape_cast %329 : vector<2x8xf32> to vector<2x8x1xf32>
    %331 = tpu.reciprocal %330 {approx = true} : vector<2x8x1xf32> -> vector<2x8x1xf32>
    %332 = vector.broadcast %331 : vector<2x8x1xf32> to vector<2x8x8xf32>
    %333 = arith.mulf %328, %332 : vector<2x8x8xf32>
    %334 = arith.truncf %333 : vector<2x8x8xf32> to vector<2x8x8xbf16>
    "tpu.trace_start"() <{level = 10 : i32, message = "bqk,bkd->bqd"}> : () -> ()
    %cst_87 = arith.constant dense<0.000000e+00> : vector<2x8x8xf32>
    %335 = tpu.matmul %334, %320, %cst_87 {dimension_numbers = #tpu.dot_dimension_numbers<[2], [1], [1], [2], [0, 0, 0, 1, 1, 2], [0], [0]>} : vector<2x8x8xbf16>, vector<2x8x8xbf16>, vector<2x8x8xf32> -> vector<2x8x8xf32>
    "tpu.trace_stop"() : () -> ()
    %336 = vector.shape_cast %335 : vector<2x8x8xf32> to vector<16x8xf32>
    %337 = vector.extract_strided_slice %247 {offsets = [16, 0], sizes = [8, 32], strides = [1, 1]} : vector<32x32xbf16> to vector<8x32xbf16>
    %338 = arith.truncf %336 : vector<16x8xf32> to vector<16x8xbf16>
    %cst_88 = arith.constant dense<0.000000e+00> : vector<16x32xf32>
    %339 = tpu.matmul %338, %337, %cst_88 {dimension_numbers = #tpu.dot_dimension_numbers<[1], [0], [0], [1], [0, 0, 1, 1], [], []>} : vector<16x8xbf16>, vector<8x32xbf16>, vector<16x32xf32> -> vector<16x32xf32>
    %340 = arith.addf %311, %339 : vector<16x32xf32>
    %341 = vector.extract_strided_slice %252 {offsets = [0, 24], sizes = [16, 8], strides = [1, 1]} : vector<16x96xf32> to vector<16x8xf32>
    %342 = vector.shape_cast %341 : vector<16x8xf32> to vector<2x8x8xf32>
    %343 = arith.truncf %342 : vector<2x8x8xf32> to vector<2x8x8xbf16>
    %344 = vector.extract_strided_slice %252 {offsets = [0, 56], sizes = [16, 8], strides = [1, 1]} : vector<16x96xf32> to vector<16x8xf32>
    %345 = vector.shape_cast %344 : vector<16x8xf32> to vector<2x8x8xf32>
    %346 = arith.truncf %345 : vector<2x8x8xf32> to vector<2x8x8xbf16>
    %347 = vector.extract_strided_slice %252 {offsets = [0, 88], sizes = [16, 8], strides = [1, 1]} : vector<16x96xf32> to vector<16x8xf32>
    %348 = vector.shape_cast %347 : vector<16x8xf32> to vector<2x8x8xf32>
    %349 = arith.truncf %348 : vector<2x8x8xf32> to vector<2x8x8xbf16>
    "tpu.trace_start"() <{level = 10 : i32, message = "bqd,bkd->bqk"}> : () -> ()
    %cst_89 = arith.constant dense<0.000000e+00> : vector<2x8x8xf32>
    %350 = tpu.matmul %343, %346, %cst_89 {dimension_numbers = #tpu.dot_dimension_numbers<[2], [2], [1], [1], [0, 0, 0, 1, 1, 1], [0], [0]>} : vector<2x8x8xbf16>, vector<2x8x8xbf16>, vector<2x8x8xf32> -> vector<2x8x8xf32>
    "tpu.trace_stop"() : () -> ()
    %cst_90 = arith.constant 0.353553385 : f32
    %351 = vector.broadcast %cst_90 : f32 to vector<2x8x8xf32>
    %352 = arith.mulf %350, %351 : vector<2x8x8xf32>
    %cst_91 = arith.constant dense<0xFF800000> : vector<2x8xf32>
    %353 = vector.multi_reduction <maximumf>, %352, %cst_91 [2] : vector<2x8x8xf32> to vector<2x8xf32>
    %354 = vector.shape_cast %353 : vector<2x8xf32> to vector<2x8x1xf32>
    %355 = vector.broadcast %354 : vector<2x8x1xf32> to vector<2x8x8xf32>
    %356 = arith.subf %352, %355 : vector<2x8x8xf32>
    %357 = math.exp %356 : vector<2x8x8xf32>
    %cst_92 = arith.constant dense<0.000000e+00> : vector<2x8xf32>
    %358 = vector.multi_reduction <add>, %357, %cst_92 [2] : vector<2x8x8xf32> to vector<2x8xf32>
    %359 = vector.shape_cast %358 : vector<2x8xf32> to vector<2x8x1xf32>
    %360 = tpu.reciprocal %359 {approx = true} : vector<2x8x1xf32> -> vector<2x8x1xf32>
    %361 = vector.broadcast %360 : vector<2x8x1xf32> to vector<2x8x8xf32>
    %362 = arith.mulf %357, %361 : vector<2x8x8xf32>
    %363 = arith.truncf %362 : vector<2x8x8xf32> to vector<2x8x8xbf16>
    "tpu.trace_start"() <{level = 10 : i32, message = "bqk,bkd->bqd"}> : () -> ()
    %cst_93 = arith.constant dense<0.000000e+00> : vector<2x8x8xf32>
    %364 = tpu.matmul %363, %349, %cst_93 {dimension_numbers = #tpu.dot_dimension_numbers<[2], [1], [1], [2], [0, 0, 0, 1, 1, 2], [0], [0]>} : vector<2x8x8xbf16>, vector<2x8x8xbf16>, vector<2x8x8xf32> -> vector<2x8x8xf32>
    "tpu.trace_stop"() : () -> ()
    %365 = vector.shape_cast %364 : vector<2x8x8xf32> to vector<16x8xf32>
    %366 = vector.extract_strided_slice %247 {offsets = [24, 0], sizes = [8, 32], strides = [1, 1]} : vector<32x32xbf16> to vector<8x32xbf16>
    %367 = arith.truncf %365 : vector<16x8xf32> to vector<16x8xbf16>
    %cst_94 = arith.constant dense<0.000000e+00> : vector<16x32xf32>
    %368 = tpu.matmul %367, %366, %cst_94 {dimension_numbers = #tpu.dot_dimension_numbers<[1], [0], [0], [1], [0, 0, 1, 1], [], []>} : vector<16x8xbf16>, vector<8x32xbf16>, vector<16x32xf32> -> vector<16x32xf32>
    %369 = arith.addf %340, %368 : vector<16x32xf32>
    %370 = vector.extract_strided_slice %0 {offsets = [17, 0], sizes = [1, 32], strides = [1, 1]} : vector<24x128xf32> to vector<1x32xf32>
    %371 = vector.broadcast %370 : vector<1x32xf32> to vector<16x32xf32>
    %372 = arith.addf %369, %371 : vector<16x32xf32>
    %373 = arith.addf %372, %243 : vector<16x32xf32>
    %374 = vector.extract_strided_slice %0 {offsets = [18, 0], sizes = [1, 32], strides = [1, 1]} : vector<24x128xf32> to vector<1x32xf32>
    %375 = vector.extract_strided_slice %0 {offsets = [19, 0], sizes = [1, 32], strides = [1, 1]} : vector<24x128xf32> to vector<1x32xf32>
    %cst_95 = arith.constant dense<0.000000e+00> : vector<16xf32>
    %376 = vector.multi_reduction <add>, %373, %cst_95 [1] : vector<16x32xf32> to vector<16xf32>
    %377 = vector.shape_cast %376 : vector<16xf32> to vector<16x1xf32>
    %cst_96 = arith.constant 3.200000e+01 : f32
    %378 = vector.broadcast %cst_96 : f32 to vector<16x1xf32>
    %379 = arith.divf %377, %378 : vector<16x1xf32>
    %380 = vector.broadcast %379 : vector<16x1xf32> to vector<16x32xf32>
    %381 = arith.subf %373, %380 : vector<16x32xf32>
    %382 = arith.mulf %381, %381 : vector<16x32xf32>
    %cst_97 = arith.constant dense<0.000000e+00> : vector<16xf32>
    %383 = vector.multi_reduction <add>, %382, %cst_97 [1] : vector<16x32xf32> to vector<16xf32>
    %384 = vector.shape_cast %383 : vector<16xf32> to vector<16x1xf32>
    %cst_98 = arith.constant 3.200000e+01 : f32
    %385 = vector.broadcast %cst_98 : f32 to vector<16x1xf32>
    %386 = arith.divf %384, %385 : vector<16x1xf32>
    %387 = vector.broadcast %379 : vector<16x1xf32> to vector<16x32xf32>
    %388 = arith.subf %373, %387 : vector<16x32xf32>
    %cst_99 = arith.constant 9.99999996E-13 : f32
    %389 = vector.broadcast %cst_99 : f32 to vector<16x1xf32>
    %390 = arith.addf %386, %389 : vector<16x1xf32>
    %391 = math.rsqrt %390 : vector<16x1xf32>
    %392 = vector.broadcast %391 : vector<16x1xf32> to vector<16x32xf32>
    %393 = arith.mulf %388, %392 : vector<16x32xf32>
    %394 = vector.broadcast %374 : vector<1x32xf32> to vector<16x32xf32>
    %395 = arith.mulf %393, %394 : vector<16x32xf32>
    %396 = vector.broadcast %375 : vector<1x32xf32> to vector<16x32xf32>
    %397 = arith.addf %395, %396 : vector<16x32xf32>
    %c1_100 = arith.constant 1 : index
    %c0_101 = arith.constant 0 : index
    %c0_102 = arith.constant 0 : index
    %398 = vector.load %arg4[%c1_100, %c0_101, %c0_102] : memref<2x32x128xbf16, #tpu.memory_space<vmem>>, vector<1x32x128xbf16>
    %399 = vector.shape_cast %398 : vector<1x32x128xbf16> to vector<32x128xbf16>
    %400 = arith.truncf %397 : vector<16x32xf32> to vector<16x32xbf16>
    %cst_103 = arith.constant dense<0.000000e+00> : vector<16x128xf32>
    %401 = tpu.matmul %400, %399, %cst_103 {dimension_numbers = #tpu.dot_dimension_numbers<[1], [0], [0], [1], [0, 0, 1, 1], [], []>} : vector<16x32xbf16>, vector<32x128xbf16>, vector<16x128xf32> -> vector<16x128xf32>
    %402 = vector.extract_strided_slice %0 {offsets = [20, 0], sizes = [1, 128], strides = [1, 1]} : vector<24x128xf32> to vector<1x128xf32>
    %403 = vector.broadcast %402 : vector<1x128xf32> to vector<16x128xf32>
    %404 = arith.addf %401, %403 : vector<16x128xf32>
    %cst_104 = arith.constant 5.000000e-01 : f32
    %405 = vector.broadcast %cst_104 : f32 to vector<16x128xf32>
    %406 = arith.mulf %405, %404 : vector<16x128xf32>
    %cst_105 = arith.constant 0.707106769 : f32
    %407 = vector.broadcast %cst_105 : f32 to vector<16x128xf32>
    %408 = arith.mulf %404, %407 : vector<16x128xf32>
    %409 = math.erf %408 : vector<16x128xf32>
    %cst_106 = arith.constant 1.000000e+00 : f32
    %410 = vector.broadcast %cst_106 : f32 to vector<16x128xf32>
    %411 = arith.addf %410, %409 : vector<16x128xf32>
    %412 = arith.mulf %406, %411 : vector<16x128xf32>
    %c1_107 = arith.constant 1 : index
    %c0_108 = arith.constant 0 : index
    %c0_109 = arith.constant 0 : index
    %413 = vector.load %arg5[%c1_107, %c0_108, %c0_109] : memref<2x128x32xbf16, #tpu.memory_space<vmem>>, vector<1x128x32xbf16>
    %414 = vector.shape_cast %413 : vector<1x128x32xbf16> to vector<128x32xbf16>
    %415 = arith.truncf %412 : vector<16x128xf32> to vector<16x128xbf16>
    %cst_110 = arith.constant dense<0.000000e+00> : vector<16x32xf32>
    %416 = tpu.matmul %415, %414, %cst_110 {dimension_numbers = #tpu.dot_dimension_numbers<[1], [0], [0], [1], [0, 0, 1, 1], [], []>} : vector<16x128xbf16>, vector<128x32xbf16>, vector<16x32xf32> -> vector<16x32xf32>
    %417 = vector.extract_strided_slice %0 {offsets = [21, 0], sizes = [1, 32], strides = [1, 1]} : vector<24x128xf32> to vector<1x32xf32>
    %418 = vector.broadcast %417 : vector<1x32xf32> to vector<16x32xf32>
    %419 = arith.addf %416, %418 : vector<16x32xf32>
    %420 = arith.addf %419, %397 : vector<16x32xf32>
    %421 = vector.extract_strided_slice %0 {offsets = [22, 0], sizes = [1, 32], strides = [1, 1]} : vector<24x128xf32> to vector<1x32xf32>
    %422 = vector.extract_strided_slice %0 {offsets = [23, 0], sizes = [1, 32], strides = [1, 1]} : vector<24x128xf32> to vector<1x32xf32>
    %cst_111 = arith.constant dense<0.000000e+00> : vector<16xf32>
    %423 = vector.multi_reduction <add>, %420, %cst_111 [1] : vector<16x32xf32> to vector<16xf32>
    %424 = vector.shape_cast %423 : vector<16xf32> to vector<16x1xf32>
    %cst_112 = arith.constant 3.200000e+01 : f32
    %425 = vector.broadcast %cst_112 : f32 to vector<16x1xf32>
    %426 = arith.divf %424, %425 : vector<16x1xf32>
    %427 = vector.broadcast %426 : vector<16x1xf32> to vector<16x32xf32>
    %428 = arith.subf %420, %427 : vector<16x32xf32>
    %429 = arith.mulf %428, %428 : vector<16x32xf32>
    %cst_113 = arith.constant dense<0.000000e+00> : vector<16xf32>
    %430 = vector.multi_reduction <add>, %429, %cst_113 [1] : vector<16x32xf32> to vector<16xf32>
    %431 = vector.shape_cast %430 : vector<16xf32> to vector<16x1xf32>
    %cst_114 = arith.constant 3.200000e+01 : f32
    %432 = vector.broadcast %cst_114 : f32 to vector<16x1xf32>
    %433 = arith.divf %431, %432 : vector<16x1xf32>
    %434 = vector.broadcast %426 : vector<16x1xf32> to vector<16x32xf32>
    %435 = arith.subf %420, %434 : vector<16x32xf32>
    %cst_115 = arith.constant 9.99999996E-13 : f32
    %436 = vector.broadcast %cst_115 : f32 to vector<16x1xf32>
    %437 = arith.addf %433, %436 : vector<16x1xf32>
    %438 = math.rsqrt %437 : vector<16x1xf32>
    %439 = vector.broadcast %438 : vector<16x1xf32> to vector<16x32xf32>
    %440 = arith.mulf %435, %439 : vector<16x32xf32>
    %441 = vector.broadcast %421 : vector<1x32xf32> to vector<16x32xf32>
    %442 = arith.mulf %440, %441 : vector<16x32xf32>
    %443 = vector.broadcast %422 : vector<1x32xf32> to vector<16x32xf32>
    %444 = arith.addf %442, %443 : vector<16x32xf32>
    %c0_116 = arith.constant 0 : index
    %c0_117 = arith.constant 0 : index
    %445 = vector.load %arg6[%c0_116, %c0_117] : memref<32x128xbf16, #tpu.memory_space<vmem>>, vector<32x128xbf16>
    %446 = arith.truncf %444 : vector<16x32xf32> to vector<16x32xbf16>
    %cst_118 = arith.constant dense<0.000000e+00> : vector<16x128xf32>
    %447 = tpu.matmul %446, %445, %cst_118 {dimension_numbers = #tpu.dot_dimension_numbers<[1], [0], [0], [1], [0, 0, 1, 1], [], []>} : vector<16x32xbf16>, vector<32x128xbf16>, vector<16x128xf32> -> vector<16x128xf32>
    %448 = vector.extract_strided_slice %0 {offsets = [2, 0], sizes = [1, 128], strides = [1, 1]} : vector<24x128xf32> to vector<1x128xf32>
    %449 = vector.broadcast %448 : vector<1x128xf32> to vector<16x128xf32>
    %450 = arith.addf %447, %449 : vector<16x128xf32>
    %cst_119 = arith.constant dense<0xFF800000> : vector<16xf32>
    %451 = vector.multi_reduction <maximumf>, %450, %cst_119 [1] : vector<16x128xf32> to vector<16xf32>
    %452 = vector.shape_cast %451 : vector<16xf32> to vector<16x1xf32>
    %453 = vector.broadcast %452 : vector<16x1xf32> to vector<16x128xf32>
    %454 = arith.subf %450, %453 : vector<16x128xf32>
    %455 = math.exp %454 : vector<16x128xf32>
    %cst_120 = arith.constant dense<0.000000e+00> : vector<16xf32>
    %456 = vector.multi_reduction <add>, %455, %cst_120 [1] : vector<16x128xf32> to vector<16xf32>
    %457 = vector.shape_cast %456 : vector<16xf32> to vector<16x1xf32>
    %458 = vector.broadcast %457 : vector<16x1xf32> to vector<16x128xf32>
    %459 = arith.divf %455, %458 : vector<16x128xf32>
    %c0_121 = arith.constant 0 : index
    %c0_122 = arith.constant 0 : index
    %460 = vector.load %arg8[%c0_121, %c0_122] : memref<16x128xf32, #tpu.memory_space<vmem>>, vector<16x128xf32>
    tpu.vector_store %arg8[%c0_121, %c0_122], %459 {strides = array<i32>} : memref<16x128xf32, #tpu.memory_space<vmem>>, vector<16x128xf32>,
    return
  }
}

</mosaic_0001>

<bundles_post_ra>
// kernel: tpu_custom_call.1
= control target key start
LH: loop header
LB: loop body
LE: loop exit
PB: predicated region body
PF: predicated region fallthrough
CT: control target
= control target key end

     0   :  { %v3956_v1 = vmov 0   ;;  %v3957_v6 = vmov 0.0   ;;  %s4714_s0 = inlined_call_operand.vmem [shape: s32[2,8,1], index: 0, kind: input, shape index: {}]   ;;  %s4715_s1 = inlined_call_operand.vmem [shape: bf16[193,32], index: 1, kind: input, shape index: {}]   ;;  %s4716_s2 = inlined_call_operand.vmem [shape: bf16[2,32,96], index: 2, kind: input, shape index: {}]   ;;  %s4717_s3 = inlined_call_operand.vmem [shape: bf16[2,32,32], index: 3, kind: input, shape index: {}]   ;;  %s4718_s4 = inlined_call_operand.vmem [shape: bf16[2,32,128], index: 4, kind: input, shape index: {}]   ;;  %s4719_s5 = inlined_call_operand.vmem [shape: bf16[2,128,32], index: 5, kind: input, shape index: {}]   ;;  %s4720_s6 = inlined_call_operand.vmem [shape: bf16[32,128], index: 6, kind: input, shape index: {}]   ;;  %s4721_s7 = inlined_call_operand.vmem [shape: f32[24,128], index: 7, kind: input, shape index: {}]   ;;  %s4722_s8 = inlined_call_operand.hbm [shape: f32[16,128], index: 8, kind: output, shape index: {}]  }
   0x1   :  { %v34_v0 = vld [vmem:[%s4714_s0] sm:$0xff]  ;;  %3790 = vset.pattern.permute.xlu0 %v3956_v1  ;;  %184 = vmatprep.subr.bf16.mxu0 %v3956_v1  ;;  %v35_v3 = vld [vmem:[%s4714_s0 + $0x8] sm:$0xff]  ;;  %v3793_v5 = vld [vmem:[%s4715_s1 + $0x10] sm:$0xff]  }
   0x2   :  { %v3791_v2 = vld [vmem:[%s4715_s1] sm:$0xff]   ;;  %42 = vperm.xlu0 %3790, %v34_v0   ;;  %v3792_v4 = vld [vmem:[%s4715_s1 + $0x8] sm:$0xff]   ;;  %3460 = vmatprep.subr.bf16.mxu1 %v3957_v6  ;;  %v3794_v7 = vld [vmem:[%s4715_s1 + $0x18] sm:$0xff]  }
   0x3   :  { %185 = vmatpush1.bf16.msra.mxu0 %v3791_v2  ;;  %v3795_v8 = vld [vmem:[%s4715_s1 + $0x20] sm:$0xff]   ;;  %v3796_v9 = vld [vmem:[%s4715_s1 + $0x28] sm:$0xff]   ;;  %v3797_v10 = vld [vmem:[%s4715_s1 + $0x30] sm:$0xff]  }
   0x4   :  { %186 = vmatprep.subr.bf16.mxu0 %v3956_v1  ;;  %v3798_v11 = vld [vmem:[%s4715_s1 + $0x38] sm:$0xff]   ;;  %v3799_v12 = vld [vmem:[%s4715_s1 + $0x40] sm:$0xff]  }
   0x6   :  { %45 = vperm.xlu0 %3790, %v35_v3  }
   0x7   :  { %187 = vmatpush1.bf16.msra.mxu0 %v3792_v4 }
   0x8   :  { %188 = vmatprep.subr.bf16.mxu0 %v3956_v1 }
   0xb   :  { %189 = vmatpush1.bf16.msra.mxu0 %v3793_v5 }
   0xc   :  { %190 = vmatprep.subr.bf16.mxu0 %v3956_v1 }
   0xf   :  { %191 = vmatpush1.bf16.msra.mxu0 %v3794_v7 }
  0x10   :  { %192 = vmatprep.subr.bf16.mxu0 %v3956_v1 }
  0x13   :  { %193 = vmatpush1.bf16.msra.mxu0 %v3795_v8 }
  0x14   :  { %194 = vmatprep.subr.bf16.mxu0 %v3956_v1 }
  0x17   :  { %195 = vmatpush1.bf16.msra.mxu0 %v3796_v9 }
  0x18   :  { %196 = vmatprep.subr.bf16.mxu0 %v3956_v1 }
  0x1b   :  { %197 = vmatpush1.bf16.msra.mxu0 %v3797_v10 }
  0x1c   :  { %198 = vmatprep.subr.bf16.mxu0 %v3956_v1 }
  0x1f   :  { %199 = vmatpush1.bf16.msra.mxu0 %v3798_v11 }
  0x20   :  { %13 = vsyncpa [#allocation3], 0  ;;  %200 = vmatprep.subr.bf16.mxu0 %v3956_v1  ;;  %v3800_v13 = vld [vmem:[%s4715_s1 + $0x48] sm:$0xff]   ;;  %v3801_v14 = vld [vmem:[%s4715_s1 + $0x50] sm:$0xff]   ;;  %vm178_vm0 = vcmask 1040384   ;;  %v36_v19 = vlaneseq  ;;  %vm174_vm10 = vcmask 531456  }
  0x21   :  { %v3802_v15 = vld [vmem:[%s4715_s1 + $0x58] sm:$0xff]   ;;  %v3803_v16 = vld [vmem:[%s4715_s1 + $0x60] ss:$0 sps:$4 sm:$0x11]   ;;  %v180_v17 = vsel %vm178_vm0, 65535, %v3956_v1  ;;  %vm225_vm13 = vcmask 261120  }
  0x22   :  { %v182_v18 = vand.u32 %v3803_v16, %v180_v17  ;;  %v37_v20 = vand.u32 127, %v36_v19  ;;  %v4066_v21 = vshrl.u32 %v36_v19, 7  ;;  %v3958_v29 = vmov 1.0|1.0   ;;  %v3804_v46 = vld [vmem:[%s4716_s2] sm:$0xff]   ;;  %v3805_v47 = vld [vmem:[%s4716_s2 + $0x8] sm:$0xff]  }
  0x23   :  { %201 = vmatpush1.bf16.msra.mxu0 %v3799_v12  ;;  %vm3959_vm14 = vmmov 0   ;;  %v31_v55 = vld [vmem:[%s4721_s7] sm:$0xff]  ;;  %v4110_v4 = vld [vmem:[%s4721_s7 + $0x8] sm:$0xff]  ;;  %s3960_s18 = smov 96   ;;  %vm339_vm15 = vcmask 64512   ;;  %s3961_s19 = smov 64  }
  0x24   :  { %202 = vmatprep.subr.bf16.mxu0 %v3956_v1  ;;  %v38_v22 = vadd.s32 128, %v37_v20  ;;  %v51_v23 = vadd.s32 128, %v4066_v21  ;;  %3462 = vmatprep.mubr.msk.bf16.mxu1 %vm3959_vm14, %v3957_v6  ;;  %v4088_v54 = vsub.s32 0, %v4066_v21  ;;  %v4095_v59 = vsub.s32 1, %v4066_v21  ;;  %s3962_s20 = smov 88   ;;  %s3963_s21 = smov 120  }
  0x25   :  { %vm466_vm0 = vcmask 1043456   ;;  %s3964_s22 = smov 56   ;;  %s3965_s23 = smov 80  }
  0x26   :  { %vm53_vm1 = vcmp.eq.s32.totalorder %v38_v22, %v51_v23  ;;  %vm59_vm4 = vcmp.eq.s32.totalorder %v38_v22, 192  ;;  %v256_v58 = vrot.slane %v31_v55, %v4088_v54  ;;  %v262_v63 = vrot.slane %v31_v55, %v4095_v59  ;;  %s3966_s24 = smov 112   ;;  %s3967_s29 = smov 48  }
  0x27   :  { %203 = vmatpush1.bf16.msra.mxu0 %v3800_v13  ;;  %v277_v5 = vrot.slane %v4110_v4, %v4088_v54  ;;  %s3968_s30 = smov 72   ;;  %s3969_s9 = smov 104  }
  0x28   :  { %204 = vmatprep.subr.bf16.mxu0 %v3956_v1  ;;  %s3970_s1 = smov 40  }
  0x2b   :  { %205 = vmatpush1.bf16.msra.mxu0 %v3801_v14 }
  0x2c   :  { %206 = vmatprep.subr.bf16.mxu0 %v3956_v1 }
  0x2f   :  { %207 = vmatpush1.bf16.msra.mxu0 %v3802_v15 }
  0x30   :  { %208 = vmatprep.subr.bf16.mxu0 %v3956_v1 }
  0x33   :  { %209 = vmatpush1.bf16.msra.mxu0 %v182_v18 }
  0x34   :  { %3452 = vmatprep.subr.bf16.mxu0 %v3957_v6 }
  0x81   :  { %v43_v24 = vpop.permute.xlu0 %42 }
  0x82   :  { %vm48_vm2 = vcmp.eq.s32.totalorder %v38_v22, %v43_v24  ;;  %vm47_vm11 = vcmp.eq.s32.totalorder %v37_v20, %v43_v24 }
  0x83   :  { %vm55_vm3 = vmor %vm48_vm2, %vm53_vm1 }
  0x84   :  { %vm61_vm6 = vmor %vm55_vm3, %vm59_vm4 }
  0x85   :  { %v46_v25 = vpop.permute.xlu0 %45  ;;  %v3221_v26 = vsel %vm61_vm6, 1.0, %v3957_v6 }
  0x86   :  { %vm50_vm5 = vcmp.eq.s32.totalorder %v38_v22, %v46_v25  ;;  %vm49_vm9 = vcmp.eq.s32.totalorder %v37_v20, %v46_v25 }
  0x87   :  { %vm57_vm7 = vmor %vm50_vm5, %vm53_vm1 }
  0x88   :  { %vm63_vm8 = vmor %vm57_vm7, %vm59_vm4 }
  0x89   :  { %v3223_v27 = vsel %vm63_vm8, 1.0, %v3957_v6  ;;  %vm3238_vm12 = vmpackc.low %vm49_vm9, %vm47_vm11 }
  0x8a   :  { %v98_v28 = vpack.c.bf16 %v3223_v27, %v3221_v26 }
  0x8c   :  { %3237 = vmatprep.mubr.msk.bf16.mxu0 %vm174_vm10, %v98_v28 }
  0x8d   :  { %3239 = vmatmul.mubr.msk.bf16.vlgmr.msra.gmra.mrb[0].mxu0 %vm3238_vm12, %v3958_v29 }
  0x8e   :  { %3453 = vmatpush3.bf16.msra.mxu0 %v3804_v46  ;;  %3456 = vmatprep.mubr.msk.bf16.mxu0 %vm3959_vm14, %v3957_v6 }
  0x8f   :  { %3454 = vmatprep.subr.bf16.mxu0 %v3957_v6 }
  0x92   :  { %3455 = vmatpush3.bf16.msra.mxu0 %v3805_v47 }
  0x93   :  { %3496 = vmatprep.subr.bf16.mxu0 %v3957_v6 }
 0x160   :  { %v218_v30 = vpop.f32.mrb[0].mxu0 }
 0x161   :  { %v220_v31 = vpop.f32.mrb[1].mxu0  ;;  %v226_v32 = vsel %vm225_vm13, %v218_v30, 0.0 }
 0x162   :  { %227 = vadd.xlane.f32.xlu1 %v226_v32  ;;  %v221_v33 = vpop.f32.mrb[2].mxu0 }
 0x163   :  { %v223_v34 = vpop.f32.mrb[3].mxu0  ;;  %v229_v35 = vsel %vm225_vm13, %v221_v33, 0.0 }
 0x166   :  { %230 = vadd.xlane.f32.xlu1 %v229_v35 }
 0x1ef   :  { %v228_v36 = vpop.xlane.xlu1 %227 }
 0x1f0   :  { %v233_v37 = vmul.f32 0.03125, %v228_v36 }
 0x1f2   :  { %v235_v38 = vsub.f32 %v218_v30, %v233_v37 }
 0x1f3   :  { %v231_v39 = vpop.xlane.xlu1 %230 }
 0x1f4   :  { %v234_v40 = vmul.f32 0.03125, %v231_v39  ;;  %v237_v41 = vmul.f32 %v235_v38, %v235_v38 }
 0x1f6   :  { %v236_v42 = vsub.f32 %v221_v33, %v234_v40  ;;  %v239_v43 = vsel %vm225_vm13, %v237_v41, 0.0 }
 0x1f7   :  { %240 = vadd.xlane.f32.xlu0 %v239_v43 }
 0x1f8   :  { %v238_v44 = vmul.f32 %v236_v42, %v236_v42 }
 0x1fa   :  { %v242_v45 = vsel %vm225_vm13, %v238_v44, 0.0 }
 0x1fb   :  { %243 = vadd.xlane.f32.xlu1 %v242_v45 }
 0x284   :  { %v241_v48 = vpop.xlane.xlu0 %240 }
 0x285   :  { %v245_v49 = vmul.f32 0.03125, %v241_v48 }
 0x287   :  { %v247_v50 = vadd.f32 1e-12, %v245_v49 }
 0x288   :  { %v244_v51 = vpop.xlane.xlu1 %243 }
 0x289   :  { %3830 = vrsqrt.f32 %v247_v50  ;;  %v246_v52 = vmul.f32 0.03125, %v244_v51 }
 0x28b   :  { %v248_v53 = vadd.f32 1e-12, %v246_v52 }
 0x28d   :  { %3832 = vrsqrt.f32 %v248_v53 }
 0x293   :  { %v3831_v56 = vpop.eup %3830 }
 0x294   :  { %v251_v57 = vmul.f32 %v3831_v56, %v235_v38 }
 0x296   :  { %v257_v61 = vmul.f32 %v256_v58, %v251_v57 }
 0x297   :  { %v3833_v60 = vpop.eup %3832 }
 0x298   :  { %v252_v62 = vmul.f32 %v3833_v60, %v236_v42  ;;  %v4098_v1 = vadd.f32 %v262_v63, %v257_v61 }
 0x29a   :  { %v258_v0 = vmul.f32 %v256_v58, %v252_v62 }
 0x29c   :  { %v4100_v2 = vadd.f32 %v262_v63, %v258_v0 }
 0x29e   :  { %v273_v3 = vpack.c.bf16 %v4100_v2, %v4098_v1 }
 0x2a0   :  { %3457 = vmatmul.mubr.msk.bf16.vlgmr.msra.gmra.mrb[4].mxu0 %vm225_vm13, %v273_v3 }
 0x2a1   :  { %3498 = vmatprep.mubr.msk.bf16.mxu0 %vm3959_vm14, %v3957_v6 }
 0x373   :  { %v327_v7 = vpop.f32.mrb[4].mxu0 }
 0x374   :  { %v328_v8 = vadd.f32 %v327_v7, %v277_v5  ;;  %v3458_v9 = vpop.f32.mrb[5].mxu0 }
 0x375   :  { %v330_v10 = vpop.f32.mrb[6].mxu0 }
 0x376   :  { %v4114_v11 = vpack.c.bf16 %v328_v8, %v328_v8  ;;  %v331_v12 = vadd.f32 %v330_v10, %v277_v5  ;;  %v3459_v13 = vpop.f32.mrb[7].mxu0 }
 0x378   :  { %337 = vrot.lane.b32.xlu1 %v4114_v11, %s3960_s18  ;;  %v4118_v14 = vpack.c.bf16 %v331_v12, %v331_v12 }
 0x37c   :  { %387 = vrot.lane.b32.xlu1 %v4118_v14, %s3960_s18 }
 0x3ea   :  { %v338_v15 = vpop.permute.xlu1 %337 }
 0x3eb   :  { %v344_v16 = vsel %vm339_vm15, %v338_v15, 0 }
 0x3ec   :  { %3461 = vmatpush3.bf16.xpose.msra.mxu1 %v344_v16 }
 0x3ed   :  { %3466 = vmatprep.subr.bf16.mxu1 %v3957_v6 }
 0x3ee   :  { %v388_v17 = vpop.permute.xlu1 %387 }
 0x3ef   :  { %v393_v18 = vsel %vm339_vm15, %v388_v17, 0 }
 0x3f3   :  { %3463 = vmatmul.mubr.msk.bf16.vlgmr.msra.gmra.mrb[0].mxu1 %vm339_vm15, %v4114_v11 }
 0x3f4   :  { %3467 = vmatpush3.bf16.xpose.msra.mxu1 %v393_v18  ;;  %3468 = vmatprep.mubr.msk.bf16.mxu1 %vm3959_vm14, %v3957_v6 }
 0x3f5   :  { %3472 = vmatprep.subr.bf16.mxu1 %v3957_v6 }
 0x3fb   :  { %3469 = vmatmul.mubr.msk.bf16.vlgmr.msra.gmra.mrb[4].mxu1 %vm339_vm15, %v4118_v14 }
 0x3fc   :  { %3474 = vmatprep.mubr.msk.bf16.mxu1 %vm3959_vm14, %v3957_v6 }
 0x4c6   :  { %v380_v19 = vpop.f32.mrb[0].mxu1 }
 0x4c7   :  { %v435_v20 = vmul.f32 0.35355338, %v380_v19  ;;  %v3464_v22 = vpop.f32.mrb[1].mxu1 }
 0x4c8   :  { %v383_v23 = vpop.f32.mrb[2].mxu1 }
 0x4c9   :  { %v3465_v24 = vpop.f32.mrb[3].mxu1  ;;  %v437_v25 = vsel %vm339_vm15, %v435_v20, -inf }
 0x4ca   :  { %438 = vmax.xlane.f32.xlu1 %v437_v25 }
 0x4ce   :  { %v429_v26 = vpop.f32.mrb[4].mxu1 }
 0x4cf   :  { %v436_v27 = vmul.f32 0.35355338, %v429_v26  ;;  %v3470_v28 = vpop.f32.mrb[5].mxu1 }
 0x4d0   :  { %v432_v29 = vpop.f32.mrb[6].mxu1 }
 0x4d1   :  { %v3471_v30 = vpop.f32.mrb[7].mxu1  ;;  %v440_v31 = vsel %vm339_vm15, %v436_v27, -inf }
 0x4d2   :  { %441 = vmax.xlane.f32.xlu0 %v440_v31 }
 0x4db   :  { %510 = vrot.lane.b32.xlu1 %v4118_v14, %s3961_s19 }
 0x557   :  { %v439_v32 = vpop.xlane.xlu1 %438 }
 0x558   :  { %v443_v33 = vsub.f32 %v435_v20, %v439_v32 }
 0x55a   :  { %v445_v34 = vmul.f32 1.442695, %v443_v33 }
 0x55b   :  { %v511_v47 = vpop.permute.xlu1 %510 }
 0x55c   :  { %3834 = vpow2.f32 %v445_v34  ;;  %v516_v49 = vsel %vm466_vm0, %v511_v47, 0 }
 0x55f   :  { %v442_v37 = vpop.xlane.xlu0 %441 }
 0x560   :  { %v444_v38 = vsub.f32 %v436_v27, %v442_v37 }
 0x562   :  { %v447_v39 = vmul.f32 1.442695, %v444_v38 }
 0x564   :  { %3836 = vpow2.f32 %v447_v39 }
 0x566   :  { %v3835_v35 = vpop.eup %3834 }
 0x567   :  { %v449_v36 = vsel %vm339_vm15, %v3835_v35, 0.0 }
 0x568   :  { %450 = vadd.xlane.f32.xlu0 %v449_v36 }
 0x56e   :  { %v3837_v40 = vpop.eup %3836 }
 0x56f   :  { %v452_v41 = vsel %vm339_vm15, %v3837_v40, 0.0 }
 0x57e   :  { %461 = vrot.lane.b32.xlu0 %v4114_v11, %s3961_s19 }
 0x59d   :  { %453 = vadd.xlane.f32.xlu0 %v452_v41 }
 0x5b3   :  { %561 = vrot.lane.b32.xlu0 %v4114_v11, %s3962_s20 }
 0x5b7   :  { %559 = vrot.lane.b32.xlu0 %v4114_v11, %s3963_s21 }
 0x5bb   :  { %611 = vrot.lane.b32.xlu0 %v4118_v14, %s3962_s20 }
 0x5bf   :  { %609 = vrot.lane.b32.xlu0 %v4118_v14, %s3963_s21 }
 0x5f5   :  { %v451_v42 = vpop.xlane.xlu0 %450 }
 0x5f6   :  { %3838 = vrcp.f32 %v451_v42 }
 0x5f9   :  { %v462_v43 = vpop.permute.xlu0 %461 }
 0x5fa   :  { %v468_v44 = vsel %vm466_vm0, %v462_v43, 0 }
 0x5fb   :  { %3473 = vmatpush3.bf16.msra.mxu1 %v468_v44 }
 0x5fc   :  { %3478 = vmatprep.subr.bf16.mxu1 %v3957_v6 }
 0x600   :  { %v3839_v45 = vpop.eup %3838 }
 0x601   :  { %v457_v46 = vmul.f32 %v3839_v45, %v3835_v35 }
 0x603   :  { %v459_v48 = vpack.c.bf16 %v457_v46, %v457_v46  ;;  %v269_v46 = vld [vmem:[%s4717_s3] sm:$0xf] }
 0x605   :  { %3475 = vmatmul.mubr.msk.bf16.vlgmr.msra.gmra.mrb[8].mxu1 %vm339_vm15, %v459_v48 }
 0x606   :  { %3479 = vmatpush3.bf16.msra.mxu1 %v516_v49  ;;  %3480 = vmatprep.mubr.msk.bf16.mxu1 %vm3959_vm14, %v3957_v6  ;;  %v833_v49 = vsel %vm466_vm0, %v269_v46, 0 }
 0x607   :  { %3484 = vmatprep.subr.bf16.mxu1 %v3957_v6 }
 0x62a   :  { %v454_v50 = vpop.xlane.xlu0 %453 }
 0x62b   :  { %3840 = vrcp.f32 %v454_v50 }
 0x62e   :  { %v562_v51 = vpop.permute.xlu0 %561 }
 0x62f   :  { %v567_v57 = vsel %vm339_vm15, %v562_v51, 0 }
 0x632   :  { %v560_v56 = vpop.permute.xlu0 %559 }
 0x635   :  { %v3841_v52 = vpop.eup %3840 }
 0x636   :  { %v458_v53 = vmul.f32 %v3841_v52, %v3837_v40  ;;  %v612_v58 = vpop.permute.xlu0 %611 }
 0x637   :  { %v617_v60 = vsel %vm339_vm15, %v612_v58, 0 }
 0x638   :  { %v460_v55 = vpack.c.bf16 %v458_v53, %v458_v53  ;;  %v270_v53 = vld [vmem:[%s4717_s3 + $0x4] sm:$0xf] }
 0x63a   :  { %3481 = vmatmul.mubr.msk.bf16.vlgmr.msra.gmra.mrb[12].mxu1 %vm339_vm15, %v460_v55  ;;  %v610_v61 = vpop.permute.xlu0 %609  ;;  %v786_v55 = vsel %vm466_vm0, %v270_v53, 0 }
 0x63b   :  { %3485 = vmatpush3.bf16.xpose.msra.mxu1 %v567_v57  ;;  %3486 = vmatprep.mubr.msk.bf16.mxu1 %vm3959_vm14, %v3957_v6 }
 0x63c   :  { %3490 = vmatprep.subr.bf16.mxu1 %v3957_v6 }
 0x642   :  { %3487 = vmatmul.mubr.msk.bf16.vlgmr.msra.gmra.mrb[16].mxu1 %vm339_vm15, %v560_v56 }
 0x643   :  { %3491 = vmatpush3.bf16.xpose.msra.mxu1 %v617_v60  ;;  %3492 = vmatprep.mubr.msk.bf16.mxu1 %vm3959_vm14, %v3957_v6 }
 0x644   :  { %3502 = vmatprep.subr.bf16.mxu1 %v3957_v6 }
 0x64a   :  { %3493 = vmatmul.mubr.msk.bf16.vlgmr.msra.gmra.mrb[20].mxu1 %vm339_vm15, %v610_v61 }
 0x64b   :  { %3504 = vmatprep.mubr.msk.bf16.mxu1 %vm3959_vm14, %v3957_v6 }
 0x6d8   :  { %v4170_v62 = vpop.f32.mrb[8].mxu1 }
 0x6d9   :  { %v3476_v63 = vpop.f32.mrb[9].mxu1 }
 0x6da   :  { %v507_v0 = vpop.f32.mrb[10].mxu1 }
 0x6db   :  { %v3477_v3 = vpop.f32.mrb[11].mxu1 }
 0x70d   :  { %v4172_v5 = vpop.f32.mrb[12].mxu1 }
 0x70e   :  { %v558_v7 = vpack.c.bf16 %v4172_v5, %v4170_v62  ;;  %v3482_v8 = vpop.f32.mrb[13].mxu1 }
 0x70f   :  { %v555_v9 = vpop.f32.mrb[14].mxu1 }
 0x710   :  { %v3483_v10 = vpop.f32.mrb[15].mxu1 }
 0x715   :  { %v603_v12 = vpop.f32.mrb[16].mxu1 }
 0x716   :  { %v659_v13 = vmul.f32 0.35355338, %v603_v12  ;;  %v3488_v15 = vpop.f32.mrb[17].mxu1 }
 0x717   :  { %v606_v16 = vpop.f32.mrb[18].mxu1 }
 0x718   :  { %v3489_v17 = vpop.f32.mrb[19].mxu1  ;;  %v661_v18 = vsel %vm339_vm15, %v659_v13, -inf }
 0x719   :  { %662 = vmax.xlane.f32.xlu1 %v661_v18 }
 0x71d   :  { %v653_v19 = vpop.f32.mrb[20].mxu1 }
 0x71e   :  { %v660_v20 = vmul.f32 0.35355338, %v653_v19  ;;  %v3494_v22 = vpop.f32.mrb[21].mxu1 }
 0x71f   :  { %v656_v23 = vpop.f32.mrb[22].mxu1 }
 0x720   :  { %v3495_v24 = vpop.f32.mrb[23].mxu1  ;;  %v664_v25 = vsel %vm339_vm15, %v660_v20, -inf }
 0x721   :  { %665 = vmax.xlane.f32.xlu0 %v664_v25 }
 0x7a6   :  { %v663_v26 = vpop.xlane.xlu1 %662 }
 0x7a7   :  { %v667_v27 = vsub.f32 %v659_v13, %v663_v26 }
 0x7a9   :  { %v669_v28 = vmul.f32 1.442695, %v667_v27 }
 0x7ab   :  { %3842 = vpow2.f32 %v669_v28 }
 0x7ae   :  { %v666_v29 = vpop.xlane.xlu0 %665 }
 0x7af   :  { %v668_v30 = vsub.f32 %v660_v20, %v666_v29 }
 0x7b1   :  { %v671_v31 = vmul.f32 1.442695, %v668_v30 }
 0x7b3   :  { %3844 = vpow2.f32 %v671_v31 }
 0x7b5   :  { %v3843_v32 = vpop.eup %3842 }
 0x7b6   :  { %v673_v33 = vsel %vm339_vm15, %v3843_v32, 0.0 }
 0x7b7   :  { %674 = vadd.xlane.f32.xlu0 %v673_v33 }
 0x7bd   :  { %v3845_v34 = vpop.eup %3844 }
 0x7be   :  { %v676_v35 = vsel %vm339_vm15, %v3845_v34, 0.0 }
 0x7bf   :  { %677 = vadd.xlane.f32.xlu1 %v676_v35 }
 0x7cd   :  { %685 = vrot.lane.b32.xlu0 %v4114_v11, %s3964_s22 }
 0x7d0   :  { %733 = vrot.lane.b32.xlu1 %v4118_v14, %s3964_s22 }
 0x7d1   :  { %928 = vrot.lane.b32.xlu0 %v4118_v14, %s3965_s23 }
 0x7d4   :  { %878 = vrot.lane.b32.xlu1 %v4114_v11, %s3965_s23 }
 0x7d5   :  { %926 = vrot.lane.b32.xlu0 %v4118_v14, %s3966_s24 }
 0x7d8   :  { %876 = vrot.lane.b32.xlu1 %v4114_v11, %s3966_s24 }
 0x844   :  { %v675_v36 = vpop.xlane.xlu0 %674 }
 0x845   :  { %3846 = vrcp.f32 %v675_v36 }
 0x848   :  { %v686_v37 = vpop.permute.xlu0 %685 }
 0x849   :  { %v691_v38 = vsel %vm466_vm0, %v686_v37, 0 }
 0x84a   :  { %3497 = vmatpush3.bf16.msra.mxu0 %v691_v38 }
 0x84b   :  { %3508 = vmatprep.subr.bf16.mxu0 %v3957_v6 }
 0x84c   :  { %v678_v39 = vpop.xlane.xlu1 %677  ;;  %v929_v50 = vpop.permute.xlu0 %928 }
 0x84d   :  { %3848 = vrcp.f32 %v678_v39  ;;  %v934_v51 = vsel %vm339_vm15, %v929_v50, 0 }
 0x84f   :  { %v3847_v40 = vpop.eup %3846 }
 0x850   :  { %v681_v41 = vmul.f32 %v3847_v40, %v3843_v32  ;;  %v734_v42 = vpop.permute.xlu1 %733  ;;  %v927_v52 = vpop.permute.xlu0 %926 }
 0x851   :  { %v739_v43 = vsel %vm466_vm0, %v734_v42, 0 }
 0x852   :  { %3503 = vmatpush3.bf16.msra.mxu1 %v739_v43  ;;  %v683_v44 = vpack.c.bf16 %v681_v41, %v681_v41 }
 0x853   :  { %3514 = vmatprep.subr.bf16.mxu1 %v3957_v6 }
 0x854   :  { %3499 = vmatmul.mubr.msk.bf16.vlgmr.msra.gmra.mrb[8].mxu0 %vm339_vm15, %v683_v44  ;;  %v879_v61 = vpop.permute.xlu1 %878 }
 0x855   :  { %3510 = vmatprep.mubr.msk.bf16.mxu0 %vm3959_vm14, %v3957_v6  ;;  %3509 = vmatpush3.bf16.msra.mxu0 %v786_v55  ;;  %v884_v5 = vsel %vm339_vm15, %v879_v61, 0 }
 0x856   :  { %3520 = vmatprep.subr.bf16.mxu0 %v3957_v6 }
 0x857   :  { %v3849_v45 = vpop.eup %3848 }
 0x858   :  { %v682_v47 = vmul.f32 %v3849_v45, %v3845_v34  ;;  %v877_v10 = vpop.permute.xlu1 %876 }
 0x85a   :  { %v684_v48 = vpack.c.bf16 %v682_v47, %v682_v47 }
 0x85c   :  { %3505 = vmatmul.mubr.msk.bf16.vlgmr.msra.gmra.mrb[24].mxu1 %vm339_vm15, %v684_v48 }
 0x85d   :  { %3515 = vmatpush3.bf16.msra.mxu1 %v833_v49  ;;  %3516 = vmatprep.mubr.msk.bf16.mxu1 %vm3959_vm14, %v3957_v6 }
 0x85e   :  { %3526 = vmatprep.subr.bf16.mxu1 %v3957_v6 }
 0x864   :  { %3517 = vmatmul.mubr.msk.bf16.vlgmr.msra.gmra.mrb[28].mxu1 %vm339_vm15, %v558_v7 }
 0x865   :  { %3528 = vmatprep.mubr.msk.bf16.mxu1 %vm3959_vm14, %v3957_v6 }
 0x866   :  { %3527 = vmatpush3.bf16.xpose.msra.mxu1 %v934_v51 }
 0x867   :  { %3538 = vmatprep.subr.bf16.mxu1 %v3957_v6 }
 0x86d   :  { %3529 = vmatmul.mubr.msk.bf16.vlgmr.msra.gmra.mrb[32].mxu1 %vm339_vm15, %v927_v52 }
 0x86e   :  { %3540 = vmatprep.mubr.msk.bf16.mxu1 %vm3959_vm14, %v3957_v6 }
 0x927   :  { %v727_v56 = vpop.f32.mrb[8].mxu0 }
 0x928   :  { %v3500_v57 = vpop.f32.mrb[9].mxu0 }
 0x929   :  { %v730_v58 = vpop.f32.mrb[10].mxu0 }
 0x92a   :  { %v3501_v60 = vpop.f32.mrb[11].mxu0  ;;  %v271_v58 = vld [vmem:[%s4717_s3 + $0x8] sm:$0xf] }
 0x92f   :  { %v775_v62 = vpop.f32.mrb[24].mxu1 }
 0x930   :  { %v781_v63 = vpack.c.bf16 %v775_v62, %v727_v56  ;;  %v3506_v0 = vpop.f32.mrb[25].mxu1  ;;  %v1103_v62 = vsel %vm466_vm0, %v271_v58, 0 }
 0x931   :  { %v778_v3 = vpop.f32.mrb[26].mxu1 }
 0x932   :  { %v3507_v7 = vpop.f32.mrb[27].mxu1  ;;  %3511 = vmatmul.mubr.msk.bf16.vlgmr.msra.gmra.mrb[12].mxu0 %vm339_vm15, %v781_v63 }
 0x933   :  { %3521 = vmatpush3.bf16.xpose.msra.mxu0 %v884_v5  ;;  %3522 = vmatprep.mubr.msk.bf16.mxu0 %vm3959_vm14, %v3957_v6 }
 0x934   :  { %3532 = vmatprep.subr.bf16.mxu0 %v3957_v6 }
 0x937   :  { %v869_v8 = vpop.f32.mrb[28].mxu1 }
 0x938   :  { %v3518_v9 = vpop.f32.mrb[29].mxu1 }
 0x939   :  { %v872_v12 = vpop.f32.mrb[30].mxu1 }
 0x93a   :  { %v3519_v13 = vpop.f32.mrb[31].mxu1  ;;  %3523 = vmatmul.mubr.msk.bf16.vlgmr.msra.gmra.mrb[16].mxu0 %vm339_vm15, %v877_v10 }
 0x93b   :  { %3534 = vmatprep.mubr.msk.bf16.mxu0 %vm3959_vm14, %v3957_v6 }
 0x940   :  { %v970_v15 = vpop.f32.mrb[32].mxu1 }
 0x941   :  { %v977_v16 = vmul.f32 0.35355338, %v970_v15  ;;  %v3530_v17 = vpop.f32.mrb[33].mxu1 }
 0x942   :  { %v973_v18 = vpop.f32.mrb[34].mxu1 }
 0x943   :  { %v3531_v19 = vpop.f32.mrb[35].mxu1  ;;  %v981_v20 = vsel %vm339_vm15, %v977_v16, -inf }
 0x944   :  { %982 = vmax.xlane.f32.xlu0 %v981_v20 }
 0x9d1   :  { %v983_v22 = vpop.xlane.xlu0 %982 }
 0x9d2   :  { %v985_v23 = vsub.f32 %v977_v16, %v983_v22 }
 0x9d4   :  { %v988_v24 = vmul.f32 1.442695, %v985_v23 }
 0x9d6   :  { %3850 = vpow2.f32 %v988_v24 }
 0x9e0   :  { %v3851_v37 = vpop.eup %3850 }
 0x9e1   :  { %v993_v38 = vsel %vm339_vm15, %v3851_v37, 0.0 }
 0xa05   :  { %v822_v25 = vpop.f32.mrb[12].mxu0 }
 0xa06   :  { %v4232_v26 = vadd.f32 %v869_v8, %v822_v25  ;;  %v3512_v27 = vpop.f32.mrb[13].mxu0 }
 0xa07   :  { %v825_v28 = vpop.f32.mrb[14].mxu0 }
 0xa08   :  { %v4234_v29 = vadd.f32 %v872_v12, %v825_v28  ;;  %v3513_v30 = vpop.f32.mrb[15].mxu0 }
 0xa0d   :  { %v920_v31 = vpop.f32.mrb[16].mxu0 }
 0xa0e   :  { %v976_v32 = vmul.f32 0.35355338, %v920_v31  ;;  %v3524_v33 = vpop.f32.mrb[17].mxu0 }
 0xa0f   :  { %v923_v34 = vpop.f32.mrb[18].mxu0 }
 0xa10   :  { %v3525_v35 = vpop.f32.mrb[19].mxu0  ;;  %v978_v36 = vsel %vm339_vm15, %v976_v32, -inf }
 0xa11   :  { %979 = vmax.xlane.f32.xlu1 %v978_v36 }
 0xa15   :  { %994 = vadd.xlane.f32.xlu1 %v993_v38 }
 0xa26   :  { %1050 = vrot.lane.b32.xlu1 %v4118_v14, %s3967_s29 }
 0xa2a   :  { %1150 = vrot.lane.b32.xlu1 %v4114_v11, %s3968_s30 }
 0xa2e   :  { %1148 = vrot.lane.b32.xlu1 %v4114_v11, %s3969_s9 }
 0xa9e   :  { %v980_v39 = vpop.xlane.xlu1 %979 }
 0xa9f   :  { %v984_v40 = vsub.f32 %v976_v32, %v980_v39 }
 0xaa1   :  { %v986_v41 = vmul.f32 1.442695, %v984_v40 }
 0xaa2   :  { %v995_v42 = vpop.xlane.xlu1 %994 }
 0xaa3   :  { %3852 = vpow2.f32 %v986_v41 }
 0xaa4   :  { %3854 = vrcp.f32 %v995_v42 }
 0xaa6   :  { %v1051_v43 = vpop.permute.xlu1 %1050 }
 0xaa7   :  { %v1056_v44 = vsel %vm466_vm0, %v1051_v43, 0 }
 0xaa8   :  { %3539 = vmatpush3.bf16.msra.mxu1 %v1056_v44 }
 0xaa9   :  { %3550 = vmatprep.subr.bf16.mxu1 %v3957_v6 }
 0xaaa   :  { %v1151_v49 = vpop.permute.xlu1 %1150 }
 0xaab   :  { %v1156_v51 = vsel %vm339_vm15, %v1151_v49, 0 }
 0xaad   :  { %v3853_v45 = vpop.eup %3852 }
 0xaae   :  { %v3855_v46 = vpop.eup %3854  ;;  %v990_v47 = vsel %vm339_vm15, %v3853_v45, 0.0  ;;  %v1149_v52 = vpop.permute.xlu1 %1148 }
 0xaaf   :  { %v999_v48 = vmul.f32 %v3855_v46, %v3851_v37  ;;  %991 = vadd.xlane.f32.xlu0 %v990_v47 }
 0xab1   :  { %v1001_v50 = vpack.c.bf16 %v999_v48, %v999_v48 }
 0xab3   :  { %3541 = vmatmul.mubr.msk.bf16.vlgmr.msra.gmra.mrb[36].mxu1 %vm339_vm15, %v1001_v50 }
 0xab4   :  { %3551 = vmatpush3.bf16.xpose.msra.mxu1 %v1156_v51  ;;  %3552 = vmatprep.mubr.msk.bf16.mxu1 %vm3959_vm14, %v3957_v6 }
 0xab5   :  { %3562 = vmatprep.subr.bf16.mxu1 %v3957_v6 }
 0xabb   :  { %3553 = vmatmul.mubr.msk.bf16.vlgmr.msra.gmra.mrb[40].mxu1 %vm339_vm15, %v1149_v52 }
 0xabc   :  { %3564 = vmatprep.mubr.msk.bf16.mxu1 %vm3959_vm14, %v3957_v6 }
 0xac5   :  { %1002 = vrot.lane.b32.xlu0 %v4114_v11, %s3967_s29 }
 0xac9   :  { %1200 = vrot.lane.b32.xlu0 %v4118_v14, %s3968_s30 }
 0xacd   :  { %1198 = vrot.lane.b32.xlu0 %v4118_v14, %s3969_s9 }
 0xb3c   :  { %v992_v53 = vpop.xlane.xlu0 %991 }
 0xb3d   :  { %3856 = vrcp.f32 %v992_v53 }
 0xb40   :  { %v1003_v55 = vpop.permute.xlu0 %1002 }
 0xb41   :  { %v1008_v56 = vsel %vm466_vm0, %v1003_v55, 0 }
 0xb42   :  { %3533 = vmatpush3.bf16.msra.mxu0 %v1008_v56 }
 0xb43   :  { %3544 = vmatprep.subr.bf16.mxu0 %v3957_v6 }
 0xb44   :  { %v1201_v15 = vpop.permute.xlu0 %1200 }
 0xb45   :  { %v1206_v20 = vsel %vm339_vm15, %v1201_v15, 0 }
 0xb47   :  { %v3857_v57 = vpop.eup %3856 }
 0xb48   :  { %v998_v60 = vmul.f32 %v3857_v57, %v3853_v45  ;;  %v1199_v23 = vpop.permute.xlu0 %1198 }
 0xb4a   :  { %v1000_v61 = vpack.c.bf16 %v998_v60, %v998_v60 }
 0xb4c   :  { %3535 = vmatmul.mubr.msk.bf16.vlgmr.msra.gmra.mrb[20].mxu0 %vm339_vm15, %v1000_v61 }
 0xb4d   :  { %3545 = vmatpush3.bf16.msra.mxu0 %v1103_v62  ;;  %3546 = vmatprep.mubr.msk.bf16.mxu0 %vm3959_vm14, %v3957_v6 }
 0xb4e   :  { %3556 = vmatprep.subr.bf16.mxu0 %v3957_v6 }
 0xb86   :  { %v1092_v63 = vpop.f32.mrb[36].mxu1 }
 0xb87   :  { %v3542_v0 = vpop.f32.mrb[37].mxu1 }
 0xb88   :  { %v1095_v3 = vpop.f32.mrb[38].mxu1 }
 0xb89   :  { %v3543_v5 = vpop.f32.mrb[39].mxu1 }
 0xb8e   :  { %v1192_v7 = vpop.f32.mrb[40].mxu1 }
 0xb8f   :  { %v1248_v8 = vmul.f32 0.35355338, %v1192_v7  ;;  %v3554_v9 = vpop.f32.mrb[41].mxu1 }
 0xb90   :  { %v1195_v10 = vpop.f32.mrb[42].mxu1  ;;  %v1423_v9 = vrot.slane %v4110_v4, %v4095_v59 }
 0xb91   :  { %v3555_v12 = vpop.f32.mrb[43].mxu1  ;;  %v1250_v13 = vsel %vm339_vm15, %v1248_v8, -inf }
 0xb92   :  { %1251 = vmax.xlane.f32.xlu1 %v1250_v13 }
 0xc1f   :  { %v1044_v16 = vpop.f32.mrb[20].mxu0  ;;  %v1252_v24 = vpop.xlane.xlu1 %1251 }
 0xc20   :  { %v1098_v17 = vpack.c.bf16 %v1092_v63, %v1044_v16  ;;  %v3536_v18 = vpop.f32.mrb[21].mxu0  ;;  %v1256_v25 = vsub.f32 %v1248_v8, %v1252_v24 }
 0xc21   :  { %v1047_v19 = vpop.f32.mrb[22].mxu0 }
 0xc22   :  { %v3537_v22 = vpop.f32.mrb[23].mxu0  ;;  %3547 = vmatmul.mubr.msk.bf16.vlgmr.msra.gmra.mrb[24].mxu0 %vm339_vm15, %v1098_v17  ;;  %v1258_v27 = vmul.f32 1.442695, %v1256_v25 }
 0xc23   :  { %3557 = vmatpush3.bf16.xpose.msra.mxu0 %v1206_v20  ;;  %3558 = vmatprep.mubr.msk.bf16.mxu0 %vm3959_vm14, %v3957_v6 }
 0xc24   :  { %3568 = vmatprep.subr.bf16.mxu0 %v3957_v6  ;;  %3858 = vpow2.f32 %v1258_v27 }
 0xc2a   :  { %3559 = vmatmul.mubr.msk.bf16.vlgmr.msra.gmra.mrb[28].mxu0 %vm339_vm15, %v1199_v23 }
 0xc2b   :  { %3570 = vmatprep.mubr.msk.bf16.mxu0 %vm3959_vm14, %v3957_v6 }
 0xc2e   :  { %v3859_v41 = vpop.eup %3858 }
 0xc2f   :  { %v1262_v42 = vsel %vm339_vm15, %v3859_v41, 0.0 }
 0xcf5   :  { %v1139_v28 = vpop.f32.mrb[24].mxu0 }
 0xcf6   :  { %v4281_v30 = vadd.f32 %v1139_v28, %v4232_v26  ;;  %v3548_v31 = vpop.f32.mrb[25].mxu0 }
 0xcf7   :  { %v1142_v32 = vpop.f32.mrb[26].mxu0 }
 0xcf8   :  { %v4284_v33 = vadd.f32 %v1142_v32, %v4234_v29  ;;  %v3549_v34 = vpop.f32.mrb[27].mxu0 }
 0xcfd   :  { %v1242_v35 = vpop.f32.mrb[28].mxu0 }
 0xcfe   :  { %v1249_v36 = vmul.f32 0.35355338, %v1242_v35  ;;  %v3560_v37 = vpop.f32.mrb[29].mxu0 }
 0xcff   :  { %v1245_v38 = vpop.f32.mrb[30].mxu0  ;;  %v3808_v37 = vld [vmem:[%s4719_s5] sm:$0xff]  }
 0xd00   :  { %v3561_v39 = vpop.f32.mrb[31].mxu0  ;;  %v1253_v40 = vsel %vm339_vm15, %v1249_v36, -inf  ;;  %v3809_v38 = vld [vmem:[%s4719_s5 + $0x8] sm:$0xff]  }
 0xd01   :  { %1254 = vmax.xlane.f32.xlu0 %v1253_v40 }
 0xd05   :  { %1263 = vadd.xlane.f32.xlu0 %v1262_v42 }
 0xd1b   :  { %1274 = vrot.lane.b32.xlu0 %v4114_v11, %s3970_s1  ;;  %v272_v11 = vld [vmem:[%s4717_s3 + $0xc] sm:$0xf] }
 0xd1c   :  { %v1375_v52 = vsel %vm466_vm0, %v272_v11, 0 }
 0xd8e   :  { %v1255_v26 = vpop.xlane.xlu0 %1254 }
 0xd8f   :  { %v1257_v29 = vsub.f32 %v1249_v36, %v1255_v26  ;;  %v3807_v36 = vld [vmem:[%s4718_s4 + $0x8] sm:$0xff]  }
 0xd91   :  { %v1260_v43 = vmul.f32 1.442695, %v1257_v29 }
 0xd92   :  { %v1264_v44 = vpop.xlane.xlu0 %1263 }
 0xd93   :  { %3860 = vpow2.f32 %v1260_v43  ;;  %v4338_v43 = vsub.s32 2, %v4066_v21 }
 0xd94   :  { %3862 = vrcp.f32 %v1264_v44 }
 0xd95   :  { %v1457_v44 = vrot.slane %v4110_v4, %v4338_v43 }
 0xd96   :  { %v1275_v45 = vpop.permute.xlu0 %1274 }
 0xd97   :  { %v1280_v46 = vsel %vm466_vm0, %v1275_v45, 0  ;;  %v1462_v45 = vsub.s32 3, %v4066_v21 }
 0xd98   :  { %3563 = vmatpush3.bf16.msra.mxu1 %v1280_v46 }
 0xd99   :  { %3574 = vmatprep.subr.bf16.mxu1 %v3957_v6 }
 0xd9d   :  { %v3861_v47 = vpop.eup %3860 }
 0xd9e   :  { %v3863_v48 = vpop.eup %3862  ;;  %v1265_v49 = vsel %vm339_vm15, %v3861_v47, 0.0 }
 0xd9f   :  { %v1270_v50 = vmul.f32 %v3863_v48, %v3859_v41  ;;  %1266 = vadd.xlane.f32.xlu1 %v1265_v49 }
 0xda1   :  { %v1272_v51 = vpack.c.bf16 %v1270_v50, %v1270_v50 }
 0xda3   :  { %3565 = vmatmul.mubr.msk.bf16.vlgmr.msra.gmra.mrb[44].mxu1 %vm339_vm15, %v1272_v51  ;;  %v1463_v51 = vrot.slane %v4110_v4, %v1462_v45 }
 0xda4   :  { %3576 = vmatprep.mubr.msk.bf16.mxu1 %vm3959_vm14, %v3957_v6  ;;  %3575 = vmatpush3.bf16.msra.mxu1 %v1375_v52 }
 0xda5   :  { %3588 = vmatprep.subr.bf16.mxu1 %v3957_v6 }
 0xdb0   :  { %1322 = vrot.lane.b32.xlu1 %v4118_v14, %s3970_s1 }
 0xe2c   :  { %v1267_v53 = vpop.xlane.xlu1 %1266 }
 0xe2d   :  { %3864 = vrcp.f32 %v1267_v53 }
 0xe30   :  { %v1323_v55 = vpop.permute.xlu1 %1322 }
 0xe31   :  { %v1328_v56 = vsel %vm466_vm0, %v1323_v55, 0 }
 0xe32   :  { %3569 = vmatpush3.bf16.msra.mxu0 %v1328_v56  ;;  %v3810_v56 = vld [vmem:[%s4719_s5 + $0x10] sm:$0xff]  }
 0xe33   :  { %3580 = vmatprep.subr.bf16.mxu0 %v3957_v6 }
 0xe37   :  { %v3865_v57 = vpop.eup %3864 }
 0xe38   :  { %v1271_v58 = vmul.f32 %v3865_v57, %v3861_v47  ;;  %v3811_v57 = vld [vmem:[%s4719_s5 + $0x18] sm:$0xff]  }
 0xe3a   :  { %v1273_v14 = vpack.c.bf16 %v1271_v58, %v1271_v58  ;;  %v3812_v58 = vld [vmem:[%s4719_s5 + $0x20] sm:$0xff]  }
 0xe3c   :  { %3571 = vmatmul.mubr.msk.bf16.vlgmr.msra.gmra.mrb[32].mxu0 %vm339_vm15, %v1273_v14  ;;  %v3813_v14 = vld [vmem:[%s4719_s5 + $0x28] sm:$0xff]  }
 0xe3d   :  { %3584 = vmatprep.mubr.msk.bf16.mxu0 %vm3959_vm14, %v3957_v6 }
 0xe76   :  { %v1316_v60 = vpop.f32.mrb[44].mxu1 }
 0xe77   :  { %v3566_v61 = vpop.f32.mrb[45].mxu1 }
 0xe78   :  { %v1319_v62 = vpop.f32.mrb[46].mxu1  ;;  %v3815_v61 = vld [vmem:[%s4719_s5 + $0x38] sm:$0xff]  }
 0xe79   :  { %v3567_v63 = vpop.f32.mrb[47].mxu1  ;;  %v1473_v62 = vsub.s32 4, %v4066_v21 }
 0xe7b   :  { %v1474_v63 = vrot.slane %v4110_v4, %v1473_v62 }
 0xf0f   :  { %v1364_v0 = vpop.f32.mrb[32].mxu0 }
 0xf10   :  { %v1370_v3 = vpack.c.bf16 %v1364_v0, %v1316_v60  ;;  %v3572_v5 = vpop.f32.mrb[33].mxu0  ;;  %v3814_v60 = vld [vmem:[%s4719_s5 + $0x30] sm:$0xff]  }
 0xf11   :  { %v1367_v7 = vpop.f32.mrb[34].mxu0 }
 0xf12   :  { %v3573_v8 = vpop.f32.mrb[35].mxu0  ;;  %3577 = vmatmul.mubr.msk.bf16.vlgmr.msra.gmra.mrb[48].mxu1 %vm339_vm15, %v1370_v3 }
 0xf13   :  { %3604 = vmatprep.mubr.msk.bf16.mxu1 %vm3959_vm14, %v3957_v6  ;;  %3589 = vmatpush3.bf16.msra.mxu1 %v3808_v37 }
 0xf14   :  { %3590 = vmatprep.subr.bf16.mxu1 %v3957_v6 }
 0xf17   :  { %3591 = vmatpush3.bf16.msra.mxu1 %v3809_v38 }
 0xf18   :  { %3592 = vmatprep.subr.bf16.mxu1 %v3957_v6 }
 0xf1b   :  { %3593 = vmatpush3.bf16.msra.mxu1 %v3810_v56  ;;  %v1687_v56 = vsub.s32 7, %v4066_v21 }
 0xf1c   :  { %3594 = vmatprep.subr.bf16.mxu1 %v3957_v6 }
 0xf1f   :  { %3595 = vmatpush3.bf16.msra.mxu1 %v3811_v57 }
 0xf20   :  { %3596 = vmatprep.subr.bf16.mxu1 %v3957_v6 }
 0xf23   :  { %3597 = vmatpush3.bf16.msra.mxu1 %v3812_v58 }
 0xf24   :  { %3598 = vmatprep.subr.bf16.mxu1 %v3957_v6 }
 0xf27   :  { %3599 = vmatpush3.bf16.msra.mxu1 %v3813_v14 }
 0xf28   :  { %3600 = vmatprep.subr.bf16.mxu1 %v3957_v6 }
 0xf2b   :  { %3601 = vmatpush3.bf16.msra.mxu1 %v3814_v60 }
 0xf2c   :  { %3602 = vmatprep.subr.bf16.mxu1 %v3957_v6 }
 0xf2f   :  { %3603 = vmatpush3.bf16.msra.mxu1 %v3815_v61 }
 0xf30   :  { %3634 = vmatprep.subr.bf16.mxu1 %v3957_v6 }
 0xfe5   :  { %v1411_v10 = vpop.f32.mrb[48].mxu1 }
 0xfe6   :  { %v1418_v12 = vadd.f32 %v1411_v10, %v4281_v30  ;;  %v3578_v13 = vpop.f32.mrb[49].mxu1 }
 0xfe7   :  { %v1414_v15 = vpop.f32.mrb[50].mxu1 }
 0xfe8   :  { %v1424_v16 = vadd.f32 %v1423_v9, %v1418_v12  ;;  %v1419_v17 = vadd.f32 %v1414_v15, %v4284_v33  ;;  %v3579_v18 = vpop.f32.mrb[51].mxu1 }
 0xfea   :  { %v1425_v19 = vadd.f32 %v1423_v9, %v1419_v17  ;;  %v1426_v20 = vadd.f32 %v1424_v16, %v4098_v1 }
 0xfec   :  { %v1428_v22 = vsel %vm225_vm13, %v1426_v20, 0.0  ;;  %v1427_v23 = vadd.f32 %v1425_v19, %v4100_v2  ;;  %v3806_v2 = vld [vmem:[%s4718_s4] sm:$0xff]  }
 0xfed   :  { %1429 = vadd.xlane.f32.xlu1 %v1428_v22  ;;  %3581 = vmatpush3.bf16.msra.mxu0 %v3806_v2 }
 0xfee   :  { %v1431_v24 = vsel %vm225_vm13, %v1427_v23, 0.0  ;;  %3582 = vmatprep.subr.bf16.mxu0 %v3957_v6 }
 0xfef   :  { %1432 = vadd.xlane.f32.xlu0 %v1431_v24  ;;  %v1560_v24 = vsub.s32 5, %v4066_v21 }
 0xff1   :  { %3583 = vmatpush3.bf16.msra.mxu0 %v3807_v36 }
 0xff2   :  { %3608 = vmatprep.subr.bf16.mxu0 %v3957_v6 }
0x107a   :  { %v1430_v25 = vpop.xlane.xlu1 %1429 }
0x107b   :  { %v1434_v27 = vmul.f32 0.03125, %v1430_v25  ;;  %v1561_v25 = vrot.slane %v4110_v4, %v1560_v24 }
0x107c   :  { %v1433_v28 = vpop.xlane.xlu0 %1432 }
0x107d   :  { %v1436_v30 = vsub.f32 %v1426_v20, %v1434_v27  ;;  %v1435_v31 = vmul.f32 0.03125, %v1433_v28 }
0x107f   :  { %v1437_v32 = vsub.f32 %v1427_v23, %v1435_v31  ;;  %v1438_v34 = vmul.f32 %v1436_v30, %v1436_v30 }
0x1081   :  { %v1440_v33 = vsel %vm225_vm13, %v1438_v34, 0.0  ;;  %v1439_v35 = vmul.f32 %v1437_v32, %v1437_v32 }
0x1082   :  { %1441 = vadd.xlane.f32.xlu0 %v1440_v33 }
0x1083   :  { %v1443_v1 = vsel %vm225_vm13, %v1439_v35, 0.0 }
0x1084   :  { %1444 = vadd.xlane.f32.xlu1 %v1443_v1 }
0x110f   :  { %v1442_v39 = vpop.xlane.xlu0 %1441 }
0x1110   :  { %v1446_v40 = vmul.f32 0.03125, %v1442_v39 }
0x1111   :  { %v1445_v41 = vpop.xlane.xlu1 %1444 }
0x1112   :  { %v1448_v42 = vadd.f32 1e-12, %v1446_v40  ;;  %v1447_v26 = vmul.f32 0.03125, %v1445_v41 }
0x1114   :  { %3866 = vrsqrt.f32 %v1448_v42  ;;  %v1449_v29 = vadd.f32 1e-12, %v1447_v26 }
0x1116   :  { %3868 = vrsqrt.f32 %v1449_v29 }
0x111e   :  { %v3867_v46 = vpop.eup %3866 }
0x111f   :  { %v1452_v47 = vmul.f32 %v3867_v46, %v1436_v30  ;;  %v3817_v46 = vld [vmem:[%s4716_s2 + $0x18] sm:$0xff]  }
0x1120   :  { %v3869_v48 = vpop.eup %3868 }
0x1121   :  { %v1458_v49 = vmul.f32 %v1457_v44, %v1452_v47  ;;  %v1453_v50 = vmul.f32 %v3869_v48, %v1437_v32 }
0x1123   :  { %v1459_v11 = vmul.f32 %v1457_v44, %v1453_v50  ;;  %v1464_v52 = vadd.f32 %v1463_v51, %v1458_v49  ;;  %v3816_v44 = vld [vmem:[%s4716_s2 + $0x10] sm:$0xff]  }
0x1125   :  { %v1465_v53 = vadd.f32 %v1463_v51, %v1459_v11 }
0x1127   :  { %v1470_v55 = vpack.c.bf16 %v1465_v53, %v1464_v52 }
0x1129   :  { %3585 = vmatmul.mubr.msk.bf16.vlgmr.msra.gmra.mrb[36].mxu0 %vm225_vm13, %v1470_v55 }
0x112a   :  { %3612 = vmatprep.mubr.msk.bf16.mxu0 %vm3959_vm14, %v3957_v6  ;;  %3609 = vmatpush3.bf16.msra.mxu0 %v3816_v44 }
0x112b   :  { %3610 = vmatprep.subr.bf16.mxu0 %v3957_v6 }
0x112e   :  { %3611 = vmatpush3.bf16.msra.mxu0 %v3817_v46 }
0x112f   :  { %3616 = vmatprep.subr.bf16.mxu0 %v3957_v6 }
0x11fc   :  { %v1524_v0 = vpop.f32.mrb[36].mxu0 }
0x11fd   :  { %v1525_v3 = vadd.f32 %v1524_v0, %v1474_v63  ;;  %v3586_v5 = vpop.f32.mrb[37].mxu0 }
0x11fe   :  { %v1527_v7 = vpop.f32.mrb[38].mxu0 }
0x11ff   :  { %v1533_v8 = vmul.f32 0.70710677, %v1525_v3  ;;  %v1528_v9 = vadd.f32 %v1527_v7, %v1474_v63  ;;  %v3587_v10 = vpop.f32.mrb[39].mxu0  ;;  %v1531_v17 = vmul.f32 0.5, %v1525_v3 }
0x1201   :  { %3870 = verf.f32 %v1533_v8  ;;  %v1534_v12 = vmul.f32 0.70710677, %v1528_v9  ;;  %v1532_v18 = vmul.f32 0.5, %v1528_v9  ;;  %v4416_v8 = vld [vmem:[%s4721_s7 + $0x10] sm:$0xff] }
0x1202   :  { %v1705_v9 = vrot.slane %v4416_v8, %v4088_v54 }
0x1203   :  { %3872 = verf.f32 %v1534_v12 }
0x120b   :  { %v3871_v13 = vpop.eup %3870 }
0x120c   :  { %v1537_v15 = vadd.f32 1.0, %v3871_v13 }
0x120d   :  { %v3873_v16 = vpop.eup %3872 }
0x120e   :  { %v1538_v19 = vadd.f32 1.0, %v3873_v16  ;;  %v1539_v20 = vmul.f32 %v1537_v15, %v1531_v17 }
0x1210   :  { %v1540_v22 = vmul.f32 %v1538_v19, %v1532_v18 }
0x1212   :  { %v1557_v23 = vpack.c.bf16 %v1540_v22, %v1539_v20 }
0x1214   :  { %3605 = vmatmul.mubr.bf16.vlgmr.msra.gmra.mrb[52].mxu1 %v1557_v23 }
0x1215   :  { %3636 = vmatprep.mubr.msk.bf16.mxu1 %vm3959_vm14, %v3957_v6 }
0x12e7   :  { %v1644_v27 = vpop.f32.mrb[52].mxu1 }
0x12e8   :  { %v1645_v28 = vadd.f32 %v1644_v27, %v1561_v25  ;;  %v3606_v30 = vpop.f32.mrb[53].mxu1 }
0x12e9   :  { %v1647_v31 = vpop.f32.mrb[54].mxu1 }
0x12ea   :  { %v1648_v32 = vadd.f32 %v1647_v31, %v1561_v25  ;;  %v3607_v34 = vpop.f32.mrb[55].mxu1  ;;  %v1651_v33 = vadd.f32 %v1645_v28, %v1464_v52  ;;  %v1681_v52 = vsub.s32 6, %v4066_v21 }
0x12ec   :  { %v1653_v35 = vsel %vm225_vm13, %v1651_v33, 0.0  ;;  %v1652_v1 = vadd.f32 %v1648_v32, %v1465_v53  ;;  %v3930_v53 = vld [vmem:[%s4721_s7 + $0x8] sm:$0xff] }
0x12ed   :  { %1654 = vadd.xlane.f32.xlu0 %v1653_v35  ;;  %v1682_v55 = vrot.slane %v3930_v53, %v1681_v52  ;;  %v1688_v63 = vrot.slane %v3930_v53, %v1687_v56 }
0x12ee   :  { %v1656_v2 = vsel %vm225_vm13, %v1652_v1, 0.0 }
0x12ef   :  { %1657 = vadd.xlane.f32.xlu1 %v1656_v2 }
0x137a   :  { %v1655_v36 = vpop.xlane.xlu0 %1654 }
0x137b   :  { %v1659_v37 = vmul.f32 0.03125, %v1655_v36 }
0x137c   :  { %v1658_v38 = vpop.xlane.xlu1 %1657 }
0x137d   :  { %v1661_v39 = vsub.f32 %v1651_v33, %v1659_v37  ;;  %v1660_v40 = vmul.f32 0.03125, %v1658_v38 }
0x137f   :  { %v1662_v4 = vsub.f32 %v1652_v1, %v1660_v40  ;;  %v1663_v41 = vmul.f32 %v1661_v39, %v1661_v39 }
0x1381   :  { %v1665_v42 = vsel %vm225_vm13, %v1663_v41, 0.0  ;;  %v1664_v26 = vmul.f32 %v1662_v4, %v1662_v4 }
0x1382   :  { %1666 = vadd.xlane.f32.xlu0 %v1665_v42 }
0x1383   :  { %v1668_v29 = vsel %vm225_vm13, %v1664_v26, 0.0 }
0x1384   :  { %1669 = vadd.xlane.f32.xlu1 %v1668_v29 }
0x140f   :  { %v1667_v47 = vpop.xlane.xlu0 %1666 }
0x1410   :  { %v1671_v48 = vmul.f32 0.03125, %v1667_v47 }
0x1411   :  { %v1670_v49 = vpop.xlane.xlu1 %1669 }
0x1412   :  { %v1673_v50 = vadd.f32 1e-12, %v1671_v48  ;;  %v1672_v51 = vmul.f32 0.03125, %v1670_v49 }
0x1414   :  { %3874 = vrsqrt.f32 %v1673_v50  ;;  %v1674_v11 = vadd.f32 1e-12, %v1672_v51 }
0x1416   :  { %3876 = vrsqrt.f32 %v1674_v11 }
0x141e   :  { %v3875_v57 = vpop.eup %3874 }
0x141f   :  { %v1677_v58 = vmul.f32 %v3875_v57, %v1661_v39 }
0x1420   :  { %v3877_v14 = vpop.eup %3876 }
0x1421   :  { %v1683_v60 = vmul.f32 %v1682_v55, %v1677_v58  ;;  %v1678_v61 = vmul.f32 %v3877_v14, %v1662_v4 }
0x1423   :  { %v1684_v0 = vmul.f32 %v1682_v55, %v1678_v61  ;;  %v4404_v3 = vadd.f32 %v1688_v63, %v1683_v60 }
0x1425   :  { %v4406_v5 = vadd.f32 %v1688_v63, %v1684_v0 }
0x1427   :  { %v1701_v7 = vpack.c.bf16 %v4406_v5, %v4404_v3 }
0x1429   :  { %3613 = vmatmul.mubr.msk.bf16.vlgmr.msra.gmra.mrb[40].mxu0 %vm225_vm13, %v1701_v7 }
0x142a   :  { %3618 = vmatprep.mubr.msk.bf16.mxu0 %vm3959_vm14, %v3957_v6 }
0x14fc   :  { %v1755_v10 = vpop.f32.mrb[40].mxu0 }
0x14fd   :  { %v1756_v12 = vadd.f32 %v1755_v10, %v1705_v9  ;;  %v3614_v13 = vpop.f32.mrb[41].mxu0 }
0x14fe   :  { %v1758_v15 = vpop.f32.mrb[42].mxu0 }
0x14ff   :  { %v4420_v16 = vpack.c.bf16 %v1756_v12, %v1756_v12  ;;  %v1759_v17 = vadd.f32 %v1758_v15, %v1705_v9  ;;  %v3615_v18 = vpop.f32.mrb[43].mxu0 }
0x1501   :  { %v4422_v19 = vpack.c.bf16 %v1759_v17, %v1759_v17  ;;  %1765 = vrot.lane.b32.xlu0 %v4420_v16, %s3960_s18 }
0x1503   :  { %1814 = vrot.lane.b32.xlu1 %v4422_v19, %s3960_s18 }
0x1573   :  { %v1766_v20 = vpop.permute.xlu0 %1765 }
0x1574   :  { %v1771_v22 = vsel %vm339_vm15, %v1766_v20, 0 }
0x1575   :  { %3617 = vmatpush3.bf16.xpose.msra.mxu0 %v1771_v22  ;;  %v1815_v54 = vpop.permute.xlu1 %1814 }
0x1576   :  { %3622 = vmatprep.subr.bf16.mxu0 %v3957_v6  ;;  %v1820_v23 = vsel %vm339_vm15, %v1815_v54, 0 }
0x157c   :  { %3619 = vmatmul.mubr.msk.bf16.vlgmr.msra.gmra.mrb[44].mxu0 %vm339_vm15, %v4420_v16 }
0x157d   :  { %3623 = vmatpush3.bf16.xpose.msra.mxu0 %v1820_v23  ;;  %3624 = vmatprep.mubr.msk.bf16.mxu0 %vm3959_vm14, %v3957_v6 }
0x157e   :  { %3628 = vmatprep.subr.bf16.mxu0 %v3957_v6 }
0x1584   :  { %3625 = vmatmul.mubr.msk.bf16.vlgmr.msra.gmra.mrb[48].mxu0 %vm339_vm15, %v4422_v19 }
0x1585   :  { %3630 = vmatprep.mubr.msk.bf16.mxu0 %vm3959_vm14, %v3957_v6 }
0x164f   :  { %v1807_v25 = vpop.f32.mrb[44].mxu0 }
0x1650   :  { %v1862_v27 = vmul.f32 0.35355338, %v1807_v25  ;;  %v3620_v28 = vpop.f32.mrb[45].mxu0 }
0x1651   :  { %v1810_v30 = vpop.f32.mrb[46].mxu0 }
0x1652   :  { %v3621_v31 = vpop.f32.mrb[47].mxu0  ;;  %v1864_v32 = vsel %vm339_vm15, %v1862_v27, -inf }
0x1653   :  { %1865 = vmax.xlane.f32.xlu1 %v1864_v32 }
0x1657   :  { %v1856_v34 = vpop.f32.mrb[48].mxu0 }
0x1658   :  { %v1863_v33 = vmul.f32 0.35355338, %v1856_v34  ;;  %v3626_v35 = vpop.f32.mrb[49].mxu0 }
0x1659   :  { %v1859_v1 = vpop.f32.mrb[50].mxu0 }
0x165a   :  { %v3627_v2 = vpop.f32.mrb[51].mxu0  ;;  %v1867_v36 = vsel %vm339_vm15, %v1863_v33, -inf }
0x165b   :  { %1868 = vmax.xlane.f32.xlu0 %v1867_v36 }
0x1664   :  { %1936 = vrot.lane.b32.xlu1 %v4422_v19, %s3961_s19 }
0x1671   :  { %1888 = vrot.lane.b32.xlu0 %v4420_v16, %s3961_s19 }
0x16e0   :  { %v1866_v37 = vpop.xlane.xlu1 %1865 }
0x16e1   :  { %v1870_v38 = vsub.f32 %v1862_v27, %v1866_v37 }
0x16e3   :  { %v1872_v39 = vmul.f32 1.442695, %v1870_v38 }
0x16e4   :  { %v1937_v40 = vpop.permute.xlu1 %1936 }
0x16e5   :  { %3878 = vpow2.f32 %v1872_v39  ;;  %v1942_v4 = vsel %vm466_vm0, %v1937_v40, 0 }
0x16e6   :  { %3635 = vmatpush3.bf16.msra.mxu1 %v1942_v4 }
0x16e7   :  { %3646 = vmatprep.subr.bf16.mxu1 %v3957_v6 }
0x16e8   :  { %v1869_v41 = vpop.xlane.xlu0 %1868 }
0x16e9   :  { %v1871_v42 = vsub.f32 %v1863_v33, %v1869_v41 }
0x16eb   :  { %v1874_v26 = vmul.f32 1.442695, %v1871_v42 }
0x16ec   :  { %v1889_v29 = vpop.permute.xlu0 %1888 }
0x16ed   :  { %3880 = vpow2.f32 %v1874_v26  ;;  %v1894_v44 = vsel %vm466_vm0, %v1889_v29, 0 }
0x16ee   :  { %3629 = vmatpush3.bf16.msra.mxu0 %v1894_v44 }
0x16ef   :  { %v3879_v46 = vpop.eup %3878  ;;  %3640 = vmatprep.subr.bf16.mxu0 %v3957_v6 }
0x16f0   :  { %v1876_v47 = vsel %vm339_vm15, %v3879_v46, 0.0 }
0x16f1   :  { %1877 = vadd.xlane.f32.xlu0 %v1876_v47 }
0x16f7   :  { %v3881_v48 = vpop.eup %3880 }
0x16f8   :  { %v1879_v49 = vsel %vm339_vm15, %v3881_v48, 0.0 }
0x16f9   :  { %1880 = vadd.xlane.f32.xlu1 %v1879_v49 }
0x1707   :  { %2037 = vrot.lane.b32.xlu0 %v4422_v19, %s3962_s20 }
0x170a   :  { %1987 = vrot.lane.b32.xlu1 %v4420_v16, %s3962_s20 }
0x170b   :  { %2035 = vrot.lane.b32.xlu0 %v4422_v19, %s3963_s21 }
0x170e   :  { %1985 = vrot.lane.b32.xlu1 %v4420_v16, %s3963_s21 }
0x177e   :  { %v1878_v50 = vpop.xlane.xlu0 %1877 }
0x177f   :  { %3882 = vrcp.f32 %v1878_v50 }
0x1782   :  { %v2038_v61 = vpop.permute.xlu0 %2037 }
0x1783   :  { %v2043_v7 = vsel %vm339_vm15, %v2038_v61, 0 }
0x1786   :  { %v1881_v51 = vpop.xlane.xlu1 %1880  ;;  %v2036_v9 = vpop.permute.xlu0 %2035 }
0x1787   :  { %3884 = vrcp.f32 %v1881_v51 }
0x1789   :  { %v3883_v11 = vpop.eup %3882 }
0x178a   :  { %v1884_v53 = vmul.f32 %v3883_v11, %v3879_v46  ;;  %v1988_v55 = vpop.permute.xlu1 %1987 }
0x178b   :  { %v1993_v58 = vsel %vm339_vm15, %v1988_v55, 0 }
0x178c   :  { %v1886_v57 = vpack.c.bf16 %v1884_v53, %v1884_v53 }
0x178e   :  { %3631 = vmatmul.mubr.msk.bf16.vlgmr.msra.gmra.mrb[52].mxu0 %vm339_vm15, %v1886_v57  ;;  %v1986_v0 = vpop.permute.xlu1 %1985  ;;  %v3278_v57 = vld [vmem:[%s4717_s3 + $0x10] sm:$0xf] }
0x178f   :  { %3641 = vmatpush3.bf16.xpose.msra.mxu0 %v1993_v58  ;;  %3642 = vmatprep.mubr.msk.bf16.mxu0 %vm3959_vm14, %v3957_v6 }
0x1790   :  { %3652 = vmatprep.subr.bf16.mxu0 %v3957_v6 }
0x1791   :  { %v3885_v14 = vpop.eup %3884 }
0x1792   :  { %v1885_v60 = vmul.f32 %v3885_v14, %v3881_v48 }
0x1794   :  { %v1887_v63 = vpack.c.bf16 %v1885_v60, %v1885_v60  ;;  %v2259_v60 = vsel %vm466_vm0, %v3278_v57, 0 }
0x1796   :  { %3637 = vmatmul.mubr.msk.bf16.vlgmr.msra.gmra.mrb[56].mxu1 %vm339_vm15, %v1887_v63  ;;  %3643 = vmatmul.mubr.msk.bf16.vlgmr.msra.gmra.mrb[56].mxu0 %vm339_vm15, %v1986_v0 }
0x1797   :  { %3647 = vmatpush3.bf16.xpose.msra.mxu1 %v2043_v7  ;;  %3648 = vmatprep.mubr.msk.bf16.mxu1 %vm3959_vm14, %v3957_v6  ;;  %v3279_v7 = vld [vmem:[%s4717_s3 + $0x14] sm:$0xf] }
0x1798   :  { %3658 = vmatprep.subr.bf16.mxu1 %v3957_v6  ;;  %3654 = vmatprep.mubr.msk.bf16.mxu0 %vm3959_vm14, %v3957_v6 }
0x179e   :  { %3649 = vmatmul.mubr.msk.bf16.vlgmr.msra.gmra.mrb[60].mxu1 %vm339_vm15, %v2036_v9  ;;  %v2212_v9 = vsel %vm466_vm0, %v3279_v7, 0 }
0x179f   :  { %3660 = vmatprep.mubr.msk.bf16.mxu1 %vm3959_vm14, %v3957_v6 }
0x1861   :  { %v4476_v10 = vpop.f32.mrb[52].mxu0 }
0x1862   :  { %v3632_v12 = vpop.f32.mrb[53].mxu0 }
0x1863   :  { %v1933_v13 = vpop.f32.mrb[54].mxu0 }
0x1864   :  { %v3633_v15 = vpop.f32.mrb[55].mxu0 }
0x1869   :  { %v4478_v17 = vpop.f32.mrb[56].mxu1  ;;  %v2029_v18 = vpop.f32.mrb[56].mxu0 }
0x186a   :  { %v1984_v20 = vpack.c.bf16 %v4478_v17, %v4476_v10  ;;  %v2085_v22 = vmul.f32 0.35355338, %v2029_v18  ;;  %v3638_v54 = vpop.f32.mrb[57].mxu1  ;;  %v3644_v23 = vpop.f32.mrb[57].mxu0 }
0x186b   :  { %v1981_v25 = vpop.f32.mrb[58].mxu1  ;;  %v2032_v27 = vpop.f32.mrb[58].mxu0 }
0x186c   :  { %v3639_v28 = vpop.f32.mrb[59].mxu1  ;;  %v3645_v30 = vpop.f32.mrb[59].mxu0  ;;  %v2087_v31 = vsel %vm339_vm15, %v2085_v22, -inf }
0x186d   :  { %2088 = vmax.xlane.f32.xlu1 %v2087_v31 }
0x1871   :  { %v2079_v32 = vpop.f32.mrb[60].mxu1 }
0x1872   :  { %v2086_v34 = vmul.f32 0.35355338, %v2079_v32  ;;  %v3650_v33 = vpop.f32.mrb[61].mxu1 }
0x1873   :  { %v2082_v35 = vpop.f32.mrb[62].mxu1 }
0x1874   :  { %v3651_v1 = vpop.f32.mrb[63].mxu1  ;;  %v2090_v2 = vsel %vm339_vm15, %v2086_v34, -inf }
0x1875   :  { %2091 = vmax.xlane.f32.xlu0 %v2090_v2 }
0x18fa   :  { %v2089_v36 = vpop.xlane.xlu1 %2088 }
0x18fb   :  { %v2093_v37 = vsub.f32 %v2085_v22, %v2089_v36 }
0x18fd   :  { %v2095_v38 = vmul.f32 1.442695, %v2093_v37 }
0x18ff   :  { %3886 = vpow2.f32 %v2095_v38 }
0x1902   :  { %v2092_v39 = vpop.xlane.xlu0 %2091 }
0x1903   :  { %v2094_v40 = vsub.f32 %v2086_v34, %v2092_v39 }
0x1905   :  { %v2097_v4 = vmul.f32 1.442695, %v2094_v40 }
0x1907   :  { %3888 = vpow2.f32 %v2097_v4 }
0x1909   :  { %v3887_v41 = vpop.eup %3886 }
0x190a   :  { %v2099_v42 = vsel %vm339_vm15, %v3887_v41, 0.0 }
0x190b   :  { %2100 = vadd.xlane.f32.xlu0 %v2099_v42 }
0x1911   :  { %v3889_v26 = vpop.eup %3888 }
0x1912   :  { %v2102_v29 = vsel %vm339_vm15, %v3889_v26, 0.0 }
0x1913   :  { %2103 = vadd.xlane.f32.xlu1 %v2102_v29 }
0x1921   :  { %2111 = vrot.lane.b32.xlu0 %v4420_v16, %s3964_s22 }
0x1924   :  { %2159 = vrot.lane.b32.xlu1 %v4422_v19, %s3964_s22 }
0x1925   :  { %2354 = vrot.lane.b32.xlu0 %v4422_v19, %s3965_s23 }
0x1928   :  { %2304 = vrot.lane.b32.xlu1 %v4420_v16, %s3965_s23 }
0x1929   :  { %2352 = vrot.lane.b32.xlu0 %v4422_v19, %s3966_s24 }
0x192c   :  { %2302 = vrot.lane.b32.xlu1 %v4420_v16, %s3966_s24 }
0x1998   :  { %v2101_v44 = vpop.xlane.xlu0 %2100 }
0x1999   :  { %3890 = vrcp.f32 %v2101_v44 }
0x199c   :  { %v2112_v46 = vpop.permute.xlu0 %2111 }
0x199d   :  { %v2117_v47 = vsel %vm466_vm0, %v2112_v46, 0 }
0x199e   :  { %3653 = vmatpush3.bf16.msra.mxu0 %v2117_v47 }
0x199f   :  { %3664 = vmatprep.subr.bf16.mxu0 %v3957_v6 }
0x19a0   :  { %v2104_v48 = vpop.xlane.xlu1 %2103  ;;  %v2355_v61 = vpop.permute.xlu0 %2354 }
0x19a1   :  { %3892 = vrcp.f32 %v2104_v48  ;;  %v2360_v63 = vsel %vm339_vm15, %v2355_v61, 0 }
0x19a3   :  { %v3891_v49 = vpop.eup %3890 }
0x19a4   :  { %v2107_v50 = vmul.f32 %v3891_v49, %v3887_v41  ;;  %v2160_v51 = vpop.permute.xlu1 %2159  ;;  %v2353_v0 = vpop.permute.xlu0 %2352 }
0x19a5   :  { %v2165_v11 = vsel %vm466_vm0, %v2160_v51, 0 }
0x19a6   :  { %3659 = vmatpush3.bf16.msra.mxu1 %v2165_v11  ;;  %v2109_v53 = vpack.c.bf16 %v2107_v50, %v2107_v50 }
0x19a7   :  { %3670 = vmatprep.subr.bf16.mxu1 %v3957_v6 }
0x19a8   :  { %3655 = vmatmul.mubr.msk.bf16.vlgmr.msra.gmra.mrb[60].mxu0 %vm339_vm15, %v2109_v53  ;;  %v2305_v17 = vpop.permute.xlu1 %2304 }
0x19a9   :  { %3666 = vmatprep.mubr.msk.bf16.mxu0 %vm3959_vm14, %v3957_v6  ;;  %3665 = vmatpush3.bf16.msra.mxu0 %v2212_v9  ;;  %v2310_v23 = vsel %vm339_vm15, %v2305_v17, 0 }
0x19aa   :  { %3676 = vmatprep.subr.bf16.mxu0 %v3957_v6 }
0x19ab   :  { %v3893_v55 = vpop.eup %3892 }
0x19ac   :  { %v2108_v58 = vmul.f32 %v3893_v55, %v3889_v26  ;;  %v2303_v30 = vpop.permute.xlu1 %2302 }
0x19ae   :  { %v2110_v14 = vpack.c.bf16 %v2108_v58, %v2108_v58 }
0x19b0   :  { %3661 = vmatmul.mubr.msk.bf16.vlgmr.msra.gmra.mrb[64].mxu1 %vm339_vm15, %v2110_v14 }
0x19b1   :  { %3671 = vmatpush3.bf16.msra.mxu1 %v2259_v60  ;;  %3672 = vmatprep.mubr.msk.bf16.mxu1 %vm3959_vm14, %v3957_v6 }
0x19b2   :  { %3682 = vmatprep.subr.bf16.mxu1 %v3957_v6 }
0x19b8   :  { %3673 = vmatmul.mubr.msk.bf16.vlgmr.msra.gmra.mrb[68].mxu1 %vm339_vm15, %v1984_v20 }
0x19b9   :  { %3684 = vmatprep.mubr.msk.bf16.mxu1 %vm3959_vm14, %v3957_v6 }
0x19ba   :  { %3683 = vmatpush3.bf16.xpose.msra.mxu1 %v2360_v63 }
0x19bb   :  { %3694 = vmatprep.subr.bf16.mxu1 %v3957_v6 }
0x19c1   :  { %3685 = vmatmul.mubr.msk.bf16.vlgmr.msra.gmra.mrb[72].mxu1 %vm339_vm15, %v2353_v0 }
0x19c2   :  { %3696 = vmatprep.mubr.msk.bf16.mxu1 %vm3959_vm14, %v3957_v6 }
0x1a7b   :  { %v2153_v10 = vpop.f32.mrb[60].mxu0 }
0x1a7c   :  { %v3656_v12 = vpop.f32.mrb[61].mxu0 }
0x1a7d   :  { %v2156_v13 = vpop.f32.mrb[62].mxu0 }
0x1a7e   :  { %v3657_v15 = vpop.f32.mrb[63].mxu0 }
0x1a83   :  { %v2201_v18 = vpop.f32.mrb[64].mxu1 }
0x1a84   :  { %v2207_v20 = vpack.c.bf16 %v2201_v18, %v2153_v10  ;;  %v3662_v22 = vpop.f32.mrb[65].mxu1 }
0x1a85   :  { %v2204_v54 = vpop.f32.mrb[66].mxu1  ;;  %v3280_v22 = vld [vmem:[%s4717_s3 + $0x18] sm:$0xf] }
0x1a86   :  { %v3663_v25 = vpop.f32.mrb[67].mxu1  ;;  %3667 = vmatmul.mubr.msk.bf16.vlgmr.msra.gmra.mrb[64].mxu0 %vm339_vm15, %v2207_v20 }
0x1a87   :  { %3677 = vmatpush3.bf16.xpose.msra.mxu0 %v2310_v23  ;;  %3678 = vmatprep.mubr.msk.bf16.mxu0 %vm3959_vm14, %v3957_v6  ;;  %v2529_v25 = vsel %vm466_vm0, %v3280_v22, 0 }
0x1a88   :  { %3688 = vmatprep.subr.bf16.mxu0 %v3957_v6 }
0x1a8b   :  { %v2295_v27 = vpop.f32.mrb[68].mxu1 }
0x1a8c   :  { %v3674_v28 = vpop.f32.mrb[69].mxu1 }
0x1a8d   :  { %v2298_v31 = vpop.f32.mrb[70].mxu1 }
0x1a8e   :  { %v3675_v32 = vpop.f32.mrb[71].mxu1  ;;  %3679 = vmatmul.mubr.msk.bf16.vlgmr.msra.gmra.mrb[68].mxu0 %vm339_vm15, %v2303_v30 }
0x1a8f   :  { %3690 = vmatprep.mubr.msk.bf16.mxu0 %vm3959_vm14, %v3957_v6 }
0x1a94   :  { %v2396_v34 = vpop.f32.mrb[72].mxu1 }
0x1a95   :  { %v2403_v33 = vmul.f32 0.35355338, %v2396_v34  ;;  %v3686_v35 = vpop.f32.mrb[73].mxu1 }
0x1a96   :  { %v2399_v1 = vpop.f32.mrb[74].mxu1 }
0x1a97   :  { %v3687_v2 = vpop.f32.mrb[75].mxu1  ;;  %v2407_v36 = vsel %vm339_vm15, %v2403_v33, -inf }
0x1a98   :  { %2408 = vmax.xlane.f32.xlu0 %v2407_v36 }
0x1b25   :  { %v2409_v37 = vpop.xlane.xlu0 %2408 }
0x1b26   :  { %v2411_v38 = vsub.f32 %v2403_v33, %v2409_v37 }
0x1b28   :  { %v2414_v39 = vmul.f32 1.442695, %v2411_v38 }
0x1b2a   :  { %3894 = vpow2.f32 %v2414_v39 }
0x1b34   :  { %v3895_v51 = vpop.eup %3894 }
0x1b35   :  { %v2419_v11 = vsel %vm339_vm15, %v3895_v51, 0.0 }
0x1b59   :  { %v2248_v40 = vpop.f32.mrb[64].mxu0 }
0x1b5a   :  { %v4538_v4 = vadd.f32 %v2295_v27, %v2248_v40  ;;  %v3668_v41 = vpop.f32.mrb[65].mxu0 }
0x1b5b   :  { %v2251_v42 = vpop.f32.mrb[66].mxu0 }
0x1b5c   :  { %v4540_v26 = vadd.f32 %v2298_v31, %v2251_v42  ;;  %v3669_v29 = vpop.f32.mrb[67].mxu0 }
0x1b61   :  { %v2346_v44 = vpop.f32.mrb[68].mxu0 }
0x1b62   :  { %v2402_v46 = vmul.f32 0.35355338, %v2346_v44  ;;  %v3680_v47 = vpop.f32.mrb[69].mxu0 }
0x1b63   :  { %v2349_v48 = vpop.f32.mrb[70].mxu0 }
0x1b64   :  { %v3681_v49 = vpop.f32.mrb[71].mxu0  ;;  %v2404_v50 = vsel %vm339_vm15, %v2402_v46, -inf }
0x1b65   :  { %2405 = vmax.xlane.f32.xlu1 %v2404_v50 }
0x1b69   :  { %2420 = vadd.xlane.f32.xlu1 %v2419_v11 }
0x1b7a   :  { %2476 = vrot.lane.b32.xlu1 %v4422_v19, %s3967_s29 }
0x1b7e   :  { %2576 = vrot.lane.b32.xlu1 %v4420_v16, %s3968_s30 }
0x1b82   :  { %2574 = vrot.lane.b32.xlu1 %v4420_v16, %s3969_s9 }
0x1bf2   :  { %v2406_v53 = vpop.xlane.xlu1 %2405 }
0x1bf3   :  { %v2410_v55 = vsub.f32 %v2402_v46, %v2406_v53 }
0x1bf5   :  { %v2412_v57 = vmul.f32 1.442695, %v2410_v55 }
0x1bf6   :  { %v2421_v58 = vpop.xlane.xlu1 %2420 }
0x1bf7   :  { %3896 = vpow2.f32 %v2412_v57 }
0x1bf8   :  { %3898 = vrcp.f32 %v2421_v58 }
0x1bfa   :  { %v2477_v14 = vpop.permute.xlu1 %2476 }
0x1bfb   :  { %v2482_v60 = vsel %vm466_vm0, %v2477_v14, 0 }
0x1bfc   :  { %3695 = vmatpush3.bf16.msra.mxu1 %v2482_v60 }
0x1bfd   :  { %3706 = vmatprep.subr.bf16.mxu1 %v3957_v6 }
0x1bfe   :  { %v2577_v9 = vpop.permute.xlu1 %2576 }
0x1bff   :  { %v2582_v12 = vsel %vm339_vm15, %v2577_v9, 0 }
0x1c01   :  { %v3897_v61 = vpop.eup %3896 }
0x1c02   :  { %v3899_v63 = vpop.eup %3898  ;;  %v2416_v0 = vsel %vm339_vm15, %v3897_v61, 0.0  ;;  %v2575_v13 = vpop.permute.xlu1 %2574 }
0x1c03   :  { %v2425_v7 = vmul.f32 %v3899_v63, %v3895_v51  ;;  %2417 = vadd.xlane.f32.xlu0 %v2416_v0 }
0x1c05   :  { %v2427_v10 = vpack.c.bf16 %v2425_v7, %v2425_v7 }
0x1c07   :  { %3697 = vmatmul.mubr.msk.bf16.vlgmr.msra.gmra.mrb[76].mxu1 %vm339_vm15, %v2427_v10 }
0x1c08   :  { %3707 = vmatpush3.bf16.xpose.msra.mxu1 %v2582_v12  ;;  %3708 = vmatprep.mubr.msk.bf16.mxu1 %vm3959_vm14, %v3957_v6 }
0x1c09   :  { %3718 = vmatprep.subr.bf16.mxu1 %v3957_v6 }
0x1c0f   :  { %3709 = vmatmul.mubr.msk.bf16.vlgmr.msra.gmra.mrb[80].mxu1 %vm339_vm15, %v2575_v13 }
0x1c10   :  { %3720 = vmatprep.mubr.msk.bf16.mxu1 %vm3959_vm14, %v3957_v6 }
0x1c19   :  { %2428 = vrot.lane.b32.xlu0 %v4420_v16, %s3967_s29 }
0x1c1d   :  { %2626 = vrot.lane.b32.xlu0 %v4422_v19, %s3968_s30 }
0x1c21   :  { %2624 = vrot.lane.b32.xlu0 %v4422_v19, %s3969_s9 }
0x1c90   :  { %v2418_v15 = vpop.xlane.xlu0 %2417 }
0x1c91   :  { %3900 = vrcp.f32 %v2418_v15 }
0x1c94   :  { %v2429_v17 = vpop.permute.xlu0 %2428 }
0x1c95   :  { %v2434_v18 = vsel %vm466_vm0, %v2429_v17, 0 }
0x1c96   :  { %3689 = vmatpush3.bf16.msra.mxu0 %v2434_v18 }
0x1c97   :  { %3700 = vmatprep.subr.bf16.mxu0 %v3957_v6 }
0x1c98   :  { %v2627_v36 = vpop.permute.xlu0 %2626 }
0x1c99   :  { %v2632_v41 = vsel %vm339_vm15, %v2627_v36, 0 }
0x1c9b   :  { %v3901_v20 = vpop.eup %3900 }
0x1c9c   :  { %v2424_v54 = vmul.f32 %v3901_v20, %v3897_v61  ;;  %v2625_v29 = vpop.permute.xlu0 %2624 }
0x1c9e   :  { %v2426_v23 = vpack.c.bf16 %v2424_v54, %v2424_v54 }
0x1ca0   :  { %3691 = vmatmul.mubr.msk.bf16.vlgmr.msra.gmra.mrb[72].mxu0 %vm339_vm15, %v2426_v23 }
0x1ca1   :  { %3701 = vmatpush3.bf16.msra.mxu0 %v2529_v25  ;;  %3702 = vmatprep.mubr.msk.bf16.mxu0 %vm3959_vm14, %v3957_v6 }
0x1ca2   :  { %3712 = vmatprep.subr.bf16.mxu0 %v3957_v6 }
0x1cda   :  { %v2518_v27 = vpop.f32.mrb[76].mxu1 }
0x1cdb   :  { %v3698_v28 = vpop.f32.mrb[77].mxu1 }
0x1cdc   :  { %v2521_v30 = vpop.f32.mrb[78].mxu1 }
0x1cdd   :  { %v3699_v31 = vpop.f32.mrb[79].mxu1 }
0x1ce2   :  { %v2618_v32 = vpop.f32.mrb[80].mxu1 }
0x1ce3   :  { %v2674_v34 = vmul.f32 0.35355338, %v2618_v32  ;;  %v3710_v33 = vpop.f32.mrb[81].mxu1 }
0x1ce4   :  { %v2621_v35 = vpop.f32.mrb[82].mxu1 }
0x1ce5   :  { %v3711_v1 = vpop.f32.mrb[83].mxu1  ;;  %v2676_v2 = vsel %vm339_vm15, %v2674_v34, -inf }
0x1ce6   :  { %2677 = vmax.xlane.f32.xlu1 %v2676_v2 }
0x1d73   :  { %v2470_v37 = vpop.f32.mrb[72].mxu0  ;;  %v2678_v44 = vpop.xlane.xlu1 %2677 }
0x1d74   :  { %v2524_v38 = vpack.c.bf16 %v2518_v27, %v2470_v37  ;;  %v3692_v39 = vpop.f32.mrb[73].mxu0  ;;  %v2682_v46 = vsub.f32 %v2674_v34, %v2678_v44  ;;  %v2849_v37 = vrot.slane %v4416_v8, %v4095_v59 }
0x1d75   :  { %v2473_v40 = vpop.f32.mrb[74].mxu0 }
0x1d76   :  { %v3693_v42 = vpop.f32.mrb[75].mxu0  ;;  %3703 = vmatmul.mubr.msk.bf16.vlgmr.msra.gmra.mrb[76].mxu0 %vm339_vm15, %v2524_v38  ;;  %v2684_v47 = vmul.f32 1.442695, %v2682_v46 }
0x1d77   :  { %3713 = vmatpush3.bf16.xpose.msra.mxu0 %v2632_v41  ;;  %3714 = vmatprep.mubr.msk.bf16.mxu0 %vm3959_vm14, %v3957_v6 }
0x1d78   :  { %3724 = vmatprep.subr.bf16.mxu0 %v3957_v6  ;;  %3902 = vpow2.f32 %v2684_v47 }
0x1d7e   :  { %3715 = vmatmul.mubr.msk.bf16.vlgmr.msra.gmra.mrb[80].mxu0 %vm339_vm15, %v2625_v29 }
0x1d7f   :  { %3726 = vmatprep.mubr.msk.bf16.mxu0 %vm3959_vm14, %v3957_v6 }
0x1d82   :  { %v3903_v63 = vpop.eup %3902 }
0x1d83   :  { %v2688_v0 = vsel %vm339_vm15, %v3903_v63, 0.0 }
0x1e49   :  { %v2565_v48 = vpop.f32.mrb[76].mxu0 }
0x1e4a   :  { %v4587_v49 = vadd.f32 %v2565_v48, %v4538_v4  ;;  %v3704_v50 = vpop.f32.mrb[77].mxu0 }
0x1e4b   :  { %v2568_v51 = vpop.f32.mrb[78].mxu0 }
0x1e4c   :  { %v4590_v11 = vadd.f32 %v2568_v51, %v4540_v26  ;;  %v3705_v53 = vpop.f32.mrb[79].mxu0 }
0x1e51   :  { %v2668_v55 = vpop.f32.mrb[80].mxu0 }
0x1e52   :  { %v2675_v57 = vmul.f32 0.35355338, %v2668_v55  ;;  %v3716_v58 = vpop.f32.mrb[81].mxu0 }
0x1e53   :  { %v2671_v14 = vpop.f32.mrb[82].mxu0 }
0x1e54   :  { %v3717_v60 = vpop.f32.mrb[83].mxu0  ;;  %v2679_v61 = vsel %vm339_vm15, %v2675_v57, -inf }
0x1e55   :  { %2680 = vmax.xlane.f32.xlu0 %v2679_v61  ;;  %v3819_v61 = vld [vmem:[%s4718_s4 + $0x18] sm:$0xff]  }
0x1e59   :  { %2689 = vadd.xlane.f32.xlu0 %v2688_v0  ;;  %v3821_v0 = vld [vmem:[%s4719_s5 + $0x48] sm:$0xff]  }
0x1e6f   :  { %2700 = vrot.lane.b32.xlu0 %v4420_v16, %s3970_s1  ;;  %v3281_v16 = vld [vmem:[%s4717_s3 + $0x1c] sm:$0xf] }
0x1e70   :  { %v2801_v22 = vsel %vm466_vm0, %v3281_v16, 0 }
0x1ee2   :  { %v2681_v4 = vpop.xlane.xlu0 %2680 }
0x1ee3   :  { %v2683_v7 = vsub.f32 %v2675_v57, %v2681_v4 }
0x1ee5   :  { %v2686_v26 = vmul.f32 1.442695, %v2683_v7 }
0x1ee6   :  { %v2690_v9 = vpop.xlane.xlu0 %2689 }
0x1ee7   :  { %3904 = vpow2.f32 %v2686_v26 }
0x1ee8   :  { %3906 = vrcp.f32 %v2690_v9 }
0x1eea   :  { %v2701_v10 = vpop.permute.xlu0 %2700 }
0x1eeb   :  { %v2706_v12 = vsel %vm466_vm0, %v2701_v10, 0 }
0x1eec   :  { %3719 = vmatpush3.bf16.msra.mxu1 %v2706_v12 }
0x1eed   :  { %3730 = vmatprep.subr.bf16.mxu1 %v3957_v6 }
0x1ef1   :  { %v3905_v13 = vpop.eup %3904 }
0x1ef2   :  { %v3907_v15 = vpop.eup %3906  ;;  %v2691_v17 = vsel %vm339_vm15, %v3905_v13, 0.0 }
0x1ef3   :  { %v2696_v18 = vmul.f32 %v3907_v15, %v3903_v63  ;;  %2692 = vadd.xlane.f32.xlu1 %v2691_v17  ;;  %v3820_v63 = vld [vmem:[%s4719_s5 + $0x40] sm:$0xff]  }
0x1ef5   :  { %v2698_v20 = vpack.c.bf16 %v2696_v18, %v2696_v18 }
0x1ef7   :  { %3721 = vmatmul.mubr.msk.bf16.vlgmr.msra.gmra.mrb[84].mxu1 %vm339_vm15, %v2698_v20 }
0x1ef8   :  { %3732 = vmatprep.mubr.msk.bf16.mxu1 %vm3959_vm14, %v3957_v6  ;;  %3731 = vmatpush3.bf16.msra.mxu1 %v2801_v22  ;;  %v2889_v22 = vrot.slane %v4416_v8, %v1462_v45  ;;  %v3823_v45 = vld [vmem:[%s4719_s5 + $0x58] sm:$0xff]  }
0x1ef9   :  { %3744 = vmatprep.subr.bf16.mxu1 %v3957_v6 }
0x1f04   :  { %2748 = vrot.lane.b32.xlu1 %v4422_v19, %s3970_s1 }
0x1f80   :  { %v2693_v54 = vpop.xlane.xlu1 %2692 }
0x1f81   :  { %3908 = vrcp.f32 %v2693_v54 }
0x1f84   :  { %v2749_v23 = vpop.permute.xlu1 %2748 }
0x1f85   :  { %v2754_v25 = vsel %vm466_vm0, %v2749_v23, 0 }
0x1f86   :  { %3725 = vmatpush3.bf16.msra.mxu0 %v2754_v25 }
0x1f87   :  { %3736 = vmatprep.subr.bf16.mxu0 %v3957_v6 }
0x1f8b   :  { %v3909_v27 = vpop.eup %3908 }
0x1f8c   :  { %v2697_v28 = vmul.f32 %v3909_v27, %v3905_v13  ;;  %v2883_v13 = vrot.slane %v4416_v8, %v4338_v43 }
0x1f8e   :  { %v2699_v19 = vpack.c.bf16 %v2697_v28, %v2697_v28  ;;  %v3822_v28 = vld [vmem:[%s4719_s5 + $0x50] sm:$0xff]  }
0x1f90   :  { %3727 = vmatmul.mubr.msk.bf16.vlgmr.msra.gmra.mrb[84].mxu0 %vm339_vm15, %v2699_v19  ;;  %v3824_v19 = vld [vmem:[%s4719_s5 + $0x60] sm:$0xff]  }
0x1f91   :  { %3740 = vmatprep.mubr.msk.bf16.mxu0 %vm3959_vm14, %v3957_v6 }
0x1fca   :  { %v2742_v30 = vpop.f32.mrb[84].mxu1 }
0x1fcb   :  { %v3722_v31 = vpop.f32.mrb[85].mxu1 }
0x1fcc   :  { %v2745_v32 = vpop.f32.mrb[86].mxu1  ;;  %v3826_v31 = vld [vmem:[%s4719_s5 + $0x70] sm:$0xff]  }
0x1fcd   :  { %v3723_v34 = vpop.f32.mrb[87].mxu1  ;;  %v3827_v32 = vld [vmem:[%s4719_s5 + $0x78] sm:$0xff]  }
0x1fce   :  { %v2901_v34 = vrot.slane %v4416_v8, %v1473_v62  ;;  %v2989_v62 = vrot.slane %v4416_v8, %v1560_v24 }
0x2063   :  { %v2790_v33 = vpop.f32.mrb[84].mxu0 }
0x2064   :  { %v2796_v35 = vpack.c.bf16 %v2790_v33, %v2742_v30  ;;  %v3728_v1 = vpop.f32.mrb[85].mxu0  ;;  %v3825_v30 = vld [vmem:[%s4719_s5 + $0x68] sm:$0xff]  }
0x2065   :  { %v2793_v2 = vpop.f32.mrb[86].mxu0 }
0x2066   :  { %v3729_v36 = vpop.f32.mrb[87].mxu0  ;;  %3733 = vmatmul.mubr.msk.bf16.vlgmr.msra.gmra.mrb[88].mxu1 %vm339_vm15, %v2796_v35 }
0x2067   :  { %3760 = vmatprep.mubr.msk.bf16.mxu1 %vm3959_vm14, %v3957_v6  ;;  %3745 = vmatpush3.bf16.msra.mxu1 %v3820_v63 }
0x2068   :  { %3746 = vmatprep.subr.bf16.mxu1 %v3957_v6 }
0x206b   :  { %3747 = vmatpush3.bf16.msra.mxu1 %v3821_v0 }
0x206c   :  { %3748 = vmatprep.subr.bf16.mxu1 %v3957_v6 }
0x206f   :  { %3749 = vmatpush3.bf16.msra.mxu1 %v3822_v28 }
0x2070   :  { %3750 = vmatprep.subr.bf16.mxu1 %v3957_v6 }
0x2073   :  { %3751 = vmatpush3.bf16.msra.mxu1 %v3823_v45 }
0x2074   :  { %3752 = vmatprep.subr.bf16.mxu1 %v3957_v6 }
0x2077   :  { %3753 = vmatpush3.bf16.msra.mxu1 %v3824_v19 }
0x2078   :  { %3754 = vmatprep.subr.bf16.mxu1 %v3957_v6 }
0x207b   :  { %3755 = vmatpush3.bf16.msra.mxu1 %v3825_v30 }
0x207c   :  { %3756 = vmatprep.subr.bf16.mxu1 %v3957_v6 }
0x207f   :  { %3757 = vmatpush3.bf16.msra.mxu1 %v3826_v31 }
0x2080   :  { %3758 = vmatprep.subr.bf16.mxu1 %v3957_v6 }
0x2083   :  { %3759 = vmatpush3.bf16.msra.mxu1 %v3827_v32  ;;  %v3931_v32 = vld [vmem:[%s4721_s7] sm:$0xff]  ;;  %s3971_s7 = smov [#allocation2]  }
0x2084   :  { %s3209_s23 = sshll.u32 %s3971_s7, 4  ;;  %s3210_s23 = int_to_ptr.vmem [resolvable:$true] %s3209_s23 }
0x2085   :  { %s3932_s24 = scalar_lea.vmem %s3210_s23, 256  ;;  %p3937_p1 = scmp.lt.s32.totalorder %s3210_s23, %s3210_s23 }
0x2086   :  { %p3933_p0 = scmp.ne.s32.totalorder %s3210_s23, %s3932_s24  ;;  %p3938_p2 = scmp.lt.s32.totalorder %s3932_s24, %s3932_s24 }
0x2088   :  { %p3939_p3 = por %p3938_p2, %p3937_p1 }
0x208a   :  { %p3940_p4 = pnand %p3939_p3, %p3933_p0 }
0x2139   :  { %v2837_v38 = vpop.f32.mrb[88].mxu1 }
0x213a   :  { %v2844_v39 = vadd.f32 %v2837_v38, %v4587_v49  ;;  %v3734_v40 = vpop.f32.mrb[89].mxu1 }
0x213b   :  { %v2840_v41 = vpop.f32.mrb[90].mxu1 }
0x213c   :  { %v2850_v42 = vadd.f32 %v2849_v37, %v2844_v39  ;;  %v2845_v29 = vadd.f32 %v2840_v41, %v4590_v11  ;;  %v3735_v44 = vpop.f32.mrb[91].mxu1 }
0x213e   :  { %v2851_v46 = vadd.f32 %v2849_v37, %v2845_v29  ;;  %v2852_v47 = vadd.f32 %v2850_v42, %v4404_v3 }
0x2140   :  { %v2854_v48 = vsel %vm225_vm13, %v2852_v47, 0.0  ;;  %v2853_v50 = vadd.f32 %v2851_v46, %v4406_v5  ;;  %v3818_v5 = vld [vmem:[%s4718_s4 + $0x10] sm:$0xff]  }
0x2141   :  { %2855 = vadd.xlane.f32.xlu1 %v2854_v48  ;;  %3737 = vmatpush3.bf16.msra.mxu0 %v3818_v5 }
0x2142   :  { %v2857_v51 = vsel %vm225_vm13, %v2853_v50, 0.0  ;;  %3738 = vmatprep.subr.bf16.mxu0 %v3957_v6 }
0x2143   :  { %2858 = vadd.xlane.f32.xlu0 %v2857_v51 }
0x2145   :  { %3739 = vmatpush3.bf16.msra.mxu0 %v3819_v61 }
0x2146   :  { %3764 = vmatprep.subr.bf16.mxu0 %v3957_v6 }
0x21ce   :  { %v2856_v59 = vpop.xlane.xlu1 %2855 }
0x21cf   :  { %v2860_v53 = vmul.f32 0.03125, %v2856_v59 }
0x21d0   :  { %v2859_v49 = vpop.xlane.xlu0 %2858 }
0x21d1   :  { %v2862_v55 = vsub.f32 %v2852_v47, %v2860_v53  ;;  %v2861_v57 = vmul.f32 0.03125, %v2859_v49 }
0x21d3   :  { %v2863_v58 = vsub.f32 %v2853_v50, %v2861_v57  ;;  %v2864_v14 = vmul.f32 %v2862_v55, %v2862_v55 }
0x21d5   :  { %v2866_v11 = vsel %vm225_vm13, %v2864_v14, 0.0  ;;  %v2865_v60 = vmul.f32 %v2863_v58, %v2863_v58 }
0x21d6   :  { %2867 = vadd.xlane.f32.xlu0 %v2866_v11 }
0x21d7   :  { %v2869_v3 = vsel %vm225_vm13, %v2865_v60, 0.0 }
0x21d8   :  { %2870 = vadd.xlane.f32.xlu1 %v2869_v3 }
0x2263   :  { %v2868_v4 = vpop.xlane.xlu0 %2867 }
0x2264   :  { %v2872_v7 = vmul.f32 0.03125, %v2868_v4 }
0x2265   :  { %v2871_v26 = vpop.xlane.xlu1 %2870 }
0x2266   :  { %v2874_v9 = vadd.f32 1e-12, %v2872_v7  ;;  %v2873_v10 = vmul.f32 0.03125, %v2871_v26 }
0x2268   :  { %3910 = vrsqrt.f32 %v2874_v9  ;;  %v2875_v12 = vadd.f32 1e-12, %v2873_v10  ;;  %v3828_v10 = vld [vmem:[%s4720_s6] sm:$0xff]  }
0x226a   :  { %3912 = vrsqrt.f32 %v2875_v12  ;;  %v3829_v12 = vld [vmem:[%s4720_s6 + $0x8] sm:$0xff]  }
0x2272   :  { %v3911_v15 = vpop.eup %3910 }
0x2273   :  { %v2878_v17 = vmul.f32 %v3911_v15, %v2862_v55 }
0x2274   :  { %v3913_v18 = vpop.eup %3912 }
0x2275   :  { %v2884_v20 = vmul.f32 %v2883_v13, %v2878_v17  ;;  %v2879_v16 = vmul.f32 %v3913_v18, %v2863_v58 }
0x2277   :  { %v2885_v54 = vmul.f32 %v2883_v13, %v2879_v16  ;;  %v2890_v23 = vadd.f32 %v2889_v22, %v2884_v20 }
0x2279   :  { %v2891_v25 = vadd.f32 %v2889_v22, %v2885_v54  ;;  %v3110_v22 = vrot.slane %v4416_v8, %v1681_v52  ;;  %v3127_v52 = vrot.slane %v3931_v32, %v4338_v43 }
0x227b   :  { %v2897_v27 = vpack.c.bf16 %v2891_v25, %v2890_v23 }
0x227d   :  { %3741 = vmatmul.mubr.msk.bf16.vlgmr.msra.gmra.mrb[88].mxu0 %vm225_vm13, %v2897_v27 }
0x227e   :  { %3768 = vmatprep.mubr.msk.bf16.mxu0 %vm3959_vm14, %v3957_v6  ;;  %3765 = vmatpush3.bf16.msra.mxu0 %v3828_v10 }
0x227f   :  { %3766 = vmatprep.subr.bf16.mxu0 %v3957_v6  ;;  %v3116_v6 = vrot.slane %v4416_v8, %v1687_v56 }
0x2282   :  { %3767 = vmatpush3.bf16.msra.mxu0 %v3829_v12 }
0x2350   :  { %v2951_v33 = vpop.f32.mrb[88].mxu0 }
0x2351   :  { %v2952_v35 = vadd.f32 %v2951_v33, %v2901_v34  ;;  %v3742_v1 = vpop.f32.mrb[89].mxu0 }
0x2352   :  { %v2954_v2 = vpop.f32.mrb[90].mxu0 }
0x2353   :  { %v2960_v36 = vmul.f32 0.70710677, %v2952_v35  ;;  %v2955_v37 = vadd.f32 %v2954_v2, %v2901_v34  ;;  %v3743_v38 = vpop.f32.mrb[91].mxu0  ;;  %v2958_v29 = vmul.f32 0.5, %v2952_v35 }
0x2355   :  { %3914 = verf.f32 %v2960_v36  ;;  %v2961_v39 = vmul.f32 0.70710677, %v2955_v37  ;;  %v2959_v44 = vmul.f32 0.5, %v2955_v37 }
0x2357   :  { %3916 = verf.f32 %v2961_v39 }
0x235f   :  { %v3915_v40 = vpop.eup %3914 }
0x2360   :  { %v2964_v41 = vadd.f32 1.0, %v3915_v40 }
0x2361   :  { %v3917_v42 = vpop.eup %3916 }
0x2362   :  { %v2965_v46 = vadd.f32 1.0, %v3917_v42  ;;  %v2966_v47 = vmul.f32 %v2964_v41, %v2958_v29 }
0x2364   :  { %v2967_v48 = vmul.f32 %v2965_v46, %v2959_v44 }
0x2366   :  { %v2985_v50 = vpack.c.bf16 %v2967_v48, %v2966_v47 }
0x2368   :  { %3761 = vmatmul.mubr.bf16.vlgmr.msra.gmra.mrb[92].mxu1 %v2985_v50 }
0x243b   :  { %v3072_v51 = vpop.f32.mrb[92].mxu1 }
0x243c   :  { %v3073_v59 = vadd.f32 %v3072_v51, %v2989_v62  ;;  %v3762_v53 = vpop.f32.mrb[93].mxu1 }
0x243d   :  { %v3075_v49 = vpop.f32.mrb[94].mxu1 }
0x243e   :  { %v3079_v55 = vadd.f32 %v3073_v59, %v2890_v23  ;;  %v3076_v57 = vadd.f32 %v3075_v49, %v2989_v62  ;;  %v3763_v58 = vpop.f32.mrb[95].mxu1 }
0x2440   :  { %v3081_v14 = vsel %vm225_vm13, %v3079_v55, 0.0  ;;  %v3080_v11 = vadd.f32 %v3076_v57, %v2891_v25 }
0x2441   :  { %3082 = vadd.xlane.f32.xlu0 %v3081_v14 }
0x2442   :  { %v3084_v60 = vsel %vm225_vm13, %v3080_v11, 0.0 }
0x2443   :  { %3085 = vadd.xlane.f32.xlu1 %v3084_v60 }
0x24ce   :  { %v3083_v3 = vpop.xlane.xlu0 %3082 }
0x24cf   :  { %v3087_v5 = vmul.f32 0.03125, %v3083_v3 }
0x24d0   :  { %v3086_v61 = vpop.xlane.xlu1 %3085 }
0x24d1   :  { %v3089_v63 = vsub.f32 %v3079_v55, %v3087_v5  ;;  %v3088_v0 = vmul.f32 0.03125, %v3086_v61 }
0x24d3   :  { %v3090_v24 = vsub.f32 %v3080_v11, %v3088_v0  ;;  %v3091_v4 = vmul.f32 %v3089_v63, %v3089_v63 }
0x24d5   :  { %v3093_v7 = vsel %vm225_vm13, %v3091_v4, 0.0  ;;  %v3092_v26 = vmul.f32 %v3090_v24, %v3090_v24 }
0x24d6   :  { %3094 = vadd.xlane.f32.xlu0 %v3093_v7 }
0x24d7   :  { %v3096_v9 = vsel %vm225_vm13, %v3092_v26, 0.0 }
0x24d8   :  { %3097 = vadd.xlane.f32.xlu1 %v3096_v9 }
0x2563   :  { %v3095_v13 = vpop.xlane.xlu0 %3094 }
0x2564   :  { %v3099_v15 = vmul.f32 0.03125, %v3095_v13 }
0x2565   :  { %v3098_v17 = vpop.xlane.xlu1 %3097 }
0x2566   :  { %v3101_v18 = vadd.f32 1e-12, %v3099_v15  ;;  %v3100_v20 = vmul.f32 0.03125, %v3098_v17 }
0x2568   :  { %3918 = vrsqrt.f32 %v3101_v18  ;;  %v3102_v16 = vadd.f32 1e-12, %v3100_v20 }
0x256a   :  { %3920 = vrsqrt.f32 %v3102_v16 }
0x2572   :  { %v3919_v54 = vpop.eup %3918 }
0x2573   :  { %v3105_v23 = vmul.f32 %v3919_v54, %v3089_v63 }
0x2574   :  { %v3921_v25 = vpop.eup %3920 }
0x2575   :  { %v3111_v27 = vmul.f32 %v3110_v22, %v3105_v23  ;;  %v3106_v28 = vmul.f32 %v3921_v25, %v3090_v24 }
0x2577   :  { %v3112_v45 = vmul.f32 %v3110_v22, %v3106_v28  ;;  %v3117_v19 = vadd.f32 %v3116_v6, %v3111_v27 }
0x2579   :  { %v3118_v30 = vadd.f32 %v3116_v6, %v3112_v45 }
0x257b   :  { %v3123_v31 = vpack.c.bf16 %v3118_v30, %v3117_v19 }
0x257d   :  { %3769 = vmatmul.mubr.msk.bf16.vlgmr.msra.gmra.mrb[92].mxu0 %vm225_vm13, %v3123_v31 }
0x2650   :  { %v3177_v34 = vpop.f32.mrb[92].mxu0 }
0x2651   :  { %v3178_v33 = vadd.f32 %v3177_v34, %v3127_v52  ;;  %v3770_v35 = vpop.f32.mrb[93].mxu0 }
0x2652   :  { %v3180_v1 = vpop.f32.mrb[94].mxu0 }
0x2653   :  { %v3181_v2 = vadd.f32 %v3180_v1, %v3127_v52  ;;  %3184 = vmax.xlane.f32.xlu0 %v3178_v33  ;;  %v3771_v21 = vpop.f32.mrb[95].mxu0 }
0x2655   :  { %3186 = vmax.xlane.f32.xlu1 %v3181_v2 }
0x26e0   :  { %v3185_v56 = vpop.xlane.xlu0 %3184 }
0x26e1   :  { %v3188_v8 = vsub.f32 %v3178_v33, %v3185_v56 }
0x26e2   :  { %v3187_v36 = vpop.xlane.xlu1 %3186 }
0x26e3   :  { %v3190_v37 = vmul.f32 1.442695, %v3188_v8  ;;  %v3189_v38 = vsub.f32 %v3181_v2, %v3187_v36 }
0x26e5   :  { %3922 = vpow2.f32 %v3190_v37  ;;  %v3192_v39 = vmul.f32 1.442695, %v3189_v38 }
0x26e7   :  { %3924 = vpow2.f32 %v3192_v39 }
0x26ef   :  { %v3923_v40 = vpop.eup %3922 }
0x26f0   :  { %3194 = vadd.xlane.f32.xlu0 %v3923_v40 }
0x26f1   :  { %v3925_v41 = vpop.eup %3924 }
0x26f2   :  { %3196 = vadd.xlane.f32.xlu1 %v3925_v41 }
0x277d   :  { %v3195_v43 = vpop.xlane.xlu0 %3194 }
0x277e   :  { %3926 = vrcp.f32 %v3195_v43 }
0x277f   :  { %v3197_v42 = vpop.xlane.xlu1 %3196 }
0x2780   :  { %3928 = vrcp.f32 %v3197_v42 }
0x2788   :  { %v3927_v29 = vpop.eup %3926 }
0x2789   :  { %v3199_v44 = vmul.f32 %v3927_v29, %v3923_v40 }
0x278a   :  { %v3929_v46 = vpop.eup %3928 }
0x278b   :  { %v3201_v47 = vmul.f32 %v3929_v46, %v3925_v41  ;;  %3202 = vst [vmem:[#allocation2] sm:$0xff] %v3199_v44 }
0x278d   :  { %3203 = vst [vmem:[#allocation2 + $0x8] sm:$0xff] %v3201_v47 }
0x278e   :  { %3943 = shalt.err (!%p3940_p4)
}
0x278f   :  { %s3944_s30 = scalar_lea.hbm %s4722_s8, 256 }
0x2790   :  { %p3945_p5 = scmp.ne.s32.totalorder %s4722_s8, %s3944_s30  ;;  %p3948_p6 = scmp.lt.u32.totalorder %s3944_s30, %s4722_s8 }
0x2792   :  { %p3950_p7 = pnand %p3948_p6, %p3945_p5 }
0x2794   :  { %3953 = shalt.err (!%p3950_p7)
}
0x2795   :  { %s3972_s0 = smov 128   ;;  %s3973_s17 = smov 8  }
0x2796   :  { %3215 = dma.vmem_to_hbm [thread:$0]  %s3210_s23, 256, %s4722_s8, [#allocation3], %s3972_s0, %s3972_s0, %s3973_s17  }
0x2797   :  { %3954 = dma.done.wait [#allocation3], 256  }
0x2798   :  { %3955 = vsyncadd [#allocation3], 4294967040 }
0x2799   :  { %3219 = vsyncpa [#allocation3], 1 }

</bundles_post_ra>
